<compile_context>
chip_gen: v7x
topology: tpu7x:2x2x1
jax: 0.10.0
libtpu: 0.0.40
codegen_flags: <defaults>
</compile_context>

<pallas_src>
import jax
import jax.numpy as jnp
from jax.experimental import pallas as pl
from jax.experimental.pallas import tpu as pltpu

Z_DIM = 1
K_IN = 28 * 28      # 784
K_PAD = 896         # 7 * 128, lane-aligned contraction dim for fc
H1 = 256
H2 = 1024
HEAD_PAD = 128      # lane-dense fused mean/logvar head (cols 0..2*z_dim-1 are real)


def _round_up(x, m):
    return ((x + m - 1) // m) * m


def encoder_kernel(x_ref, w1_ref, b1_ref, w2_ref, b2_ref, wh_ref, bh_ref, out_ref):
    # x: (TB, K_PAD) bf16 (padded K columns are zero)
    x = x_ref[...]

    # fc: 896 -> 256.  bf16 MXU matmul, f32 accumulate; bias + ReLU in f32.
    h1 = jnp.dot(x, w1_ref[...], preferred_element_type=jnp.float32) + b1_ref[...]
    h1 = jnp.maximum(h1, 0.0).astype(jnp.bfloat16)

    # fc2: 256 -> 1024.
    h2 = jnp.dot(h1, w2_ref[...], preferred_element_type=jnp.float32) + b2_ref[...]
    h2 = jnp.maximum(h2, 0.0).astype(jnp.bfloat16)

    # Fused mean/logvar head: 1024 -> 128 (zero-padded), single lane-dense store.
    out_ref[...] = (
        jnp.dot(h2, wh_ref[...], preferred_element_type=jnp.float32) + bh_ref[...]
    )


def prepare_kernel_params(params):
    """Pad / fuse / cast the f32 PyTorch-style params into kernel layout."""
    z = params["wm"].shape[1]

    # fc weight: zero-pad K 784 -> 896, cast bf16.
    w1 = jnp.zeros((K_PAD, H1), jnp.float32).at[:K_IN, :].set(params["w1"])
    w1 = w1.astype(jnp.bfloat16)

    w2 = params["w2"].astype(jnp.bfloat16)

    # Fused head weight/bias: [wm | wv] zero-padded to 128 output lanes.
    wh = jnp.zeros((H2, HEAD_PAD), jnp.float32)
    wh = wh.at[:, :z].set(params["wm"]).at[:, z:2 * z].set(params["wv"])
    wh = wh.astype(jnp.bfloat16)

    bh = jnp.zeros((1, HEAD_PAD), jnp.float32)
    bh = bh.at[:, :z].set(params["bm"]).at[:, z:2 * z].set(params["bv"])

    return {
        "w1": w1, "b1": params["b1"].astype(jnp.float32),
        "w2": w2, "b2": params["b2"].astype(jnp.float32),
        "wh": wh, "bh": bh,
    }


def encoder_forward(x_nchw, kparams, z_dim=Z_DIM):
    """x_nchw: (B, 1, 28, 28). Returns (mean, logvar), each (B, z_dim) f32."""
    B = x_nchw.shape[0]
    x_flat = x_nchw.reshape(B, -1).astype(jnp.float32)   # nn.Flatten()

    # Batch tiling: TB multiple of 8, capped at 512; pad B up to a multiple of TB.
    B8 = max(8, _round_up(B, 8))
    TB = min(512, B8)
    B_pad = _round_up(B8, TB)

    x_pad = jnp.zeros((B_pad, K_PAD), jnp.float32).at[:B, :K_IN].set(x_flat)
    x_pad = x_pad.astype(jnp.bfloat16)

    grid = (B_pad // TB,)

    flops = 2 * B_pad * (K_PAD * H1 + H1 * H2 + H2 * HEAD_PAD)
    bytes_accessed = (
        x_pad.size * 2
        + kparams["w1"].size * 2 + kparams["w2"].size * 2 + kparams["wh"].size * 2
        + kparams["b1"].size * 4 + kparams["b2"].size * 4 + kparams["bh"].size * 4
        + B_pad * HEAD_PAD * 4
    )

    out = pl.pallas_call(
        encoder_kernel,
        out_shape=jax.ShapeDtypeStruct((B_pad, HEAD_PAD), jnp.float32),
        grid_spec=pltpu.PrefetchScalarGridSpec(
            num_scalar_prefetch=0,
            grid=grid,
            in_specs=[
                pl.BlockSpec((TB, K_PAD), lambda i: (i, 0)),       # x tile
                pl.BlockSpec((K_PAD, H1), lambda i: (0, 0)),       # w1 (resident)
                pl.BlockSpec((1, H1), lambda i: (0, 0)),           # b1
                pl.BlockSpec((H1, H2), lambda i: (0, 0)),          # w2 (resident)
                pl.BlockSpec((1, H2), lambda i: (0, 0)),           # b2
                pl.BlockSpec((H2, HEAD_PAD), lambda i: (0, 0)),    # fused head w
                pl.BlockSpec((1, HEAD_PAD), lambda i: (0, 0)),     # fused head b
            ],
            out_specs=pl.BlockSpec((TB, HEAD_PAD), lambda i: (i, 0)),
        ),
        compiler_params=pltpu.CompilerParams(
            dimension_semantics=("parallel",),
            vmem_limit_bytes=32 * 1024 * 1024,
        ),
        cost_estimate=pl.CostEstimate(
            flops=flops, transcendentals=0, bytes_accessed=bytes_accessed),
    )(
        x_pad,
        kparams["w1"], kparams["b1"],
        kparams["w2"], kparams["b2"],
        kparams["wh"], kparams["bh"],
    )

    head = out[:B, :2 * z_dim]
    return head[:, :z_dim], head[:, z_dim:2 * z_dim]


def init_params(key, z_dim=Z_DIM):
    """Deterministic PyTorch-Linear-style init: U(-1/sqrt(fan_in), 1/sqrt(fan_in)).
    Weights stored as (in_features, out_features); biases as (1, out_features)."""
    def linear(k, fan_in, fan_out):
        kw, kb = jax.random.split(k)
        bound = 1.0 / jnp.sqrt(fan_in)
        w = jax.random.uniform(kw, (fan_in, fan_out), jnp.float32, -bound, bound)
        b = jax.random.uniform(kb, (1, fan_out), jnp.float32, -bound, bound)
        return w, b

    k1, k2, k3, k4 = jax.random.split(key, 4)
    w1, b1 = linear(k1, K_IN, H1)
    w2, b2 = linear(k2, H1, H2)
    wm, bm = linear(k3, H2, z_dim)
    wv, bv = linear(k4, H2, z_dim)
    return {"w1": w1, "b1": b1, "w2": w2, "b2": b2,
            "wm": wm, "bm": bm, "wv": wv, "bv": bv}


def encoder_reference_f32(x_nchw, params):
    """Pure-JAX f32 reference of the PyTorch forward."""
    B = x_nchw.shape[0]
    x = x_nchw.reshape(B, -1).astype(jnp.float32)
    h1 = jnp.maximum(x @ params["w1"] + params["b1"], 0.0)
    h2 = jnp.maximum(h1 @ params["w2"] + params["b2"], 0.0)
    return h2 @ params["wm"] + params["bm"], h2 @ params["wv"] + params["bv"]


def encoder_reference_bf16(x_nchw, params):
    """Precision-matched reference (same bf16 casts as the kernel)."""
    B = x_nchw.shape[0]
    x = x_nchw.reshape(B, -1).astype(jnp.float32).astype(jnp.bfloat16)
    w1 = params["w1"].astype(jnp.bfloat16)
    w2 = params["w2"].astype(jnp.bfloat16)
    wm = params["wm"].astype(jnp.bfloat16)
    wv = params["wv"].astype(jnp.bfloat16)
    h1 = jnp.maximum(
        jnp.dot(x, w1, preferred_element_type=jnp.float32) + params["b1"], 0.0
    ).astype(jnp.bfloat16)
    h2 = jnp.maximum(
        jnp.dot(h1, w2, preferred_element_type=jnp.float32) + params["b2"], 0.0
    ).astype(jnp.bfloat16)
    mean = jnp.dot(h2, wm, preferred_element_type=jnp.float32) + params["bm"]
    logvar = jnp.dot(h2, wv, preferred_element_type=jnp.float32) + params["bv"]
    return mean, logvar


if __name__ == "__main__":
    key = jax.random.PRNGKey(0)
    kx, kp = jax.random.split(key)

    B, z_dim = 8, Z_DIM
    x = jax.random.normal(kx, (B, 1, 28, 28), dtype=jnp.float32)  # NCHW, like MNIST
    params = init_params(kp, z_dim=z_dim)
    kparams = prepare_kernel_params(params)

    mean, logvar = jax.block_until_ready(encoder_forward(x, kparams, z_dim=z_dim))

    assert mean.shape == (B, z_dim) and logvar.shape == (B, z_dim)

    # Strict check against a precision-matched (bf16) reference.
    mean_b, logvar_b = encoder_reference_bf16(x, params)
    assert jnp.allclose(mean, mean_b, atol=1e-3, rtol=1e-3)
    assert jnp.allclose(logvar, logvar_b, atol=1e-3, rtol=1e-3)

    # Loose semantic check against the f32 PyTorch-equivalent forward
    # (bf16 weights/activations introduce ~1e-2 relative error).
    mean_f, logvar_f = encoder_reference_f32(x, params)
    assert jnp.allclose(mean, mean_f, atol=5e-2, rtol=5e-2)
    assert jnp.allclose(logvar, logvar_f, atol=5e-2, rtol=5e-2)

    print("KERNEL_OK")
</pallas_src>

<mosaic_0001>
module attributes {stable_mosaic.version = 11 : i64} {
  func.func @encoder_kernel(%arg0: i32, %arg1: memref<8x896xbf16, #tpu.memory_space<vmem>>, %arg2: memref<896x256xbf16, #tpu.memory_space<vmem>>, %arg3: memref<1x256xf32, #tpu.memory_space<vmem>>, %arg4: memref<256x1024xbf16, #tpu.memory_space<vmem>>, %arg5: memref<1x1024xf32, #tpu.memory_space<vmem>>, %arg6: memref<1024x128xbf16, #tpu.memory_space<vmem>>, %arg7: memref<1x128xf32, #tpu.memory_space<vmem>>, %arg8: memref<8x128xf32, #tpu.memory_space<vmem>>) attributes {dimension_semantics = [#tpu.dimension_semantics<parallel>], iteration_bounds = array<i64: 1>, scalar_prefetch = 0 : i64, scratch_operands = 0 : i64, tpu.core_type = #tpu.core_type<tc>, window_params = [{transform_indices = @transform_0, window_bounds = array<i64: 8, 896>}, {pipeline_mode = #tpu.pipeline_mode<synchronous>, transform_indices = @transform_1, window_bounds = array<i64: 896, 256>}, {pipeline_mode = #tpu.pipeline_mode<synchronous>, transform_indices = @transform_2, window_bounds = array<i64: 1, 256>}, {pipeline_mode = #tpu.pipeline_mode<synchronous>, transform_indices = @transform_3, window_bounds = array<i64: 256, 1024>}, {pipeline_mode = #tpu.pipeline_mode<synchronous>, transform_indices = @transform_4, window_bounds = array<i64: 1, 1024>}, {pipeline_mode = #tpu.pipeline_mode<synchronous>, transform_indices = @transform_5, window_bounds = array<i64: 1024, 128>}, {pipeline_mode = #tpu.pipeline_mode<synchronous>, transform_indices = @transform_6, window_bounds = array<i64: 1, 128>}, {transform_indices = @transform_7, window_bounds = array<i64: 8, 128>}]} {
    %c0 = arith.constant 0 : index
    %c0_0 = arith.constant 0 : index
    %0 = vector.load %arg1[%c0, %c0_0] : memref<8x896xbf16, #tpu.memory_space<vmem>>, vector<8x896xbf16>
    %c0_1 = arith.constant 0 : index
    %c0_2 = arith.constant 0 : index
    %1 = vector.load %arg2[%c0_1, %c0_2] : memref<896x256xbf16, #tpu.memory_space<vmem>>, vector<896x256xbf16>
    %cst = arith.constant dense<0.000000e+00> : vector<8x256xf32>
    %2 = tpu.matmul %0, %1, %cst {dimension_numbers = #tpu.dot_dimension_numbers<[1], [0], [0], [1], [0, 0, 1, 1], [], []>} : vector<8x896xbf16>, vector<896x256xbf16>, vector<8x256xf32> -> vector<8x256xf32>
    %c0_3 = arith.constant 0 : index
    %c0_4 = arith.constant 0 : index
    %3 = vector.load %arg3[%c0_3, %c0_4] : memref<1x256xf32, #tpu.memory_space<vmem>>, vector<1x256xf32>
    %4 = vector.broadcast %3 : vector<1x256xf32> to vector<8x256xf32>
    %5 = arith.addf %2, %4 : vector<8x256xf32>
    %cst_5 = arith.constant 0.000000e+00 : f32
    %6 = vector.broadcast %cst_5 : f32 to vector<8x256xf32>
    %7 = arith.maximumf %5, %6 : vector<8x256xf32>
    %8 = arith.truncf %7 : vector<8x256xf32> to vector<8x256xbf16>
    %c0_6 = arith.constant 0 : index
    %c0_7 = arith.constant 0 : index
    %9 = vector.load %arg4[%c0_6, %c0_7] : memref<256x1024xbf16, #tpu.memory_space<vmem>>, vector<256x1024xbf16>
    %cst_8 = arith.constant dense<0.000000e+00> : vector<8x1024xf32>
    %10 = tpu.matmul %8, %9, %cst_8 {dimension_numbers = #tpu.dot_dimension_numbers<[1], [0], [0], [1], [0, 0, 1, 1], [], []>} : vector<8x256xbf16>, vector<256x1024xbf16>, vector<8x1024xf32> -> vector<8x1024xf32>
    %c0_9 = arith.constant 0 : index
    %c0_10 = arith.constant 0 : index
    %11 = vector.load %arg5[%c0_9, %c0_10] : memref<1x1024xf32, #tpu.memory_space<vmem>>, vector<1x1024xf32>
    %12 = vector.broadcast %11 : vector<1x1024xf32> to vector<8x1024xf32>
    %13 = arith.addf %10, %12 : vector<8x1024xf32>
    %cst_11 = arith.constant 0.000000e+00 : f32
    %14 = vector.broadcast %cst_11 : f32 to vector<8x1024xf32>
    %15 = arith.maximumf %13, %14 : vector<8x1024xf32>
    %16 = arith.truncf %15 : vector<8x1024xf32> to vector<8x1024xbf16>
    %c0_12 = arith.constant 0 : index
    %c0_13 = arith.constant 0 : index
    %17 = vector.load %arg6[%c0_12, %c0_13] : memref<1024x128xbf16, #tpu.memory_space<vmem>>, vector<1024x128xbf16>
    %cst_14 = arith.constant dense<0.000000e+00> : vector<8x128xf32>
    %18 = tpu.matmul %16, %17, %cst_14 {dimension_numbers = #tpu.dot_dimension_numbers<[1], [0], [0], [1], [0, 0, 1, 1], [], []>} : vector<8x1024xbf16>, vector<1024x128xbf16>, vector<8x128xf32> -> vector<8x128xf32>
    %c0_15 = arith.constant 0 : index
    %c0_16 = arith.constant 0 : index
    %19 = vector.load %arg7[%c0_15, %c0_16] : memref<1x128xf32, #tpu.memory_space<vmem>>, vector<1x128xf32>
    %20 = vector.broadcast %19 : vector<1x128xf32> to vector<8x128xf32>
    %21 = arith.addf %18, %20 : vector<8x128xf32>
    %c0_17 = arith.constant 0 : index
    %c0_18 = arith.constant 0 : index
    %22 = vector.load %arg8[%c0_17, %c0_18] : memref<8x128xf32, #tpu.memory_space<vmem>>, vector<8x128xf32>
    tpu.vector_store %arg8[%c0_17, %c0_18], %21 {strides = array<i32>} : memref<8x128xf32, #tpu.memory_space<vmem>>, vector<8x128xf32>,
    return
  }
  func.func @transform_0(%arg0: i32) -> (i32, i32) {
    %c0_i32 = arith.constant 0 : i32
    %c0_i32_0 = arith.constant 0 : i32
    return %arg0, %c0_i32 : i32, i32
  }
  func.func @transform_1(%arg0: i32) -> (i32, i32) {
    %c0_i32 = arith.constant 0 : i32
    %c0_i32_0 = arith.constant 0 : i32
    %c0_i32_1 = arith.constant 0 : i32
    return %c0_i32, %c0_i32_0 : i32, i32
  }
  func.func @transform_2(%arg0: i32) -> (i32, i32) {
    %c0_i32 = arith.constant 0 : i32
    %c0_i32_0 = arith.constant 0 : i32
    %c0_i32_1 = arith.constant 0 : i32
    return %c0_i32, %c0_i32_0 : i32, i32
  }
  func.func @transform_3(%arg0: i32) -> (i32, i32) {
    %c0_i32 = arith.constant 0 : i32
    %c0_i32_0 = arith.constant 0 : i32
    %c0_i32_1 = arith.constant 0 : i32
    return %c0_i32, %c0_i32_0 : i32, i32
  }
  func.func @transform_4(%arg0: i32) -> (i32, i32) {
    %c0_i32 = arith.constant 0 : i32
    %c0_i32_0 = arith.constant 0 : i32
    %c0_i32_1 = arith.constant 0 : i32
    return %c0_i32, %c0_i32_0 : i32, i32
  }
  func.func @transform_5(%arg0: i32) -> (i32, i32) {
    %c0_i32 = arith.constant 0 : i32
    %c0_i32_0 = arith.constant 0 : i32
    %c0_i32_1 = arith.constant 0 : i32
    return %c0_i32, %c0_i32_0 : i32, i32
  }
  func.func @transform_6(%arg0: i32) -> (i32, i32) {
    %c0_i32 = arith.constant 0 : i32
    %c0_i32_0 = arith.constant 0 : i32
    %c0_i32_1 = arith.constant 0 : i32
    return %c0_i32, %c0_i32_0 : i32, i32
  }
  func.func @transform_7(%arg0: i32) -> (i32, i32) {
    %c0_i32 = arith.constant 0 : i32
    %c0_i32_0 = arith.constant 0 : i32
    return %arg0, %c0_i32 : i32, i32
  }
}

</mosaic_0001>

<bundles_post_ra>
// kernel: tpu_custom_call.1
= control target key start
LH: loop header
LB: loop body
LE: loop exit
PB: predicated region body
PF: predicated region fallthrough
CT: control target
= control target key end

     0   :  { %12 = vsyncpa [#allocation3], 0  ;;  %s3605_s0 = inlined_call_operand.hbm [shape: bf16[8,896], index: 0, kind: input, shape index: {}]   ;;  %s3606_s1 = inlined_call_operand.hbm [shape: bf16[896,256], index: 1, kind: input, shape index: {}]   ;;  %s3607_s2 = inlined_call_operand.vmem [shape: f32[1,256], index: 2, kind: input, shape index: {}]   ;;  %s3608_s3 = inlined_call_operand.hbm [shape: bf16[256,1024], index: 3, kind: input, shape index: {}]   ;;  %s3609_s4 = inlined_call_operand.vmem [shape: f32[1,1024], index: 4, kind: input, shape index: {}]   ;;  %s3610_s5 = inlined_call_operand.hbm [shape: bf16[1024,128], index: 5, kind: input, shape index: {}]   ;;  %s3611_s6 = inlined_call_operand.vmem [shape: f32[1,128], index: 6, kind: input, shape index: {}]   ;;  %s3612_s7 = inlined_call_operand.hbm [shape: f32[8,128], index: 7, kind: output, shape index: {}]  }
   0x1   :  { %13 = vsyncpa [#allocation6], 0 }
   0x2   :  { %14 = vsyncpa [#allocation9], 0 }
   0x3   :  { %15 = vsyncpa [#allocation4], 0  ;;  %s3432_s24 = smov [#allocation5]   ;;  %s3314_s28 = scalar_lea.hbm %s3606_s1, 14336 }
   0x4   :  { %s31_s25 = sshll.u32 %s3432_s24, 4  ;;  %p3315_p0 = scmp.ne.s32.totalorder %s3606_s1, %s3314_s28  ;;  %s32_s25 = int_to_ptr.vmem [resolvable:$true] %s31_s25 }
   0x5   :  { %p3318_p1 = scmp.lt.u32.totalorder %s3314_s28, %s3606_s1 }
   0x7   :  { %p3320_p2 = pnand %p3318_p1, %p3315_p0 }
   0x9   :  { %3323 = shalt.err (!%p3320_p2)
}
   0xa   :  { %s3324_s10 = scalar_lea.vmem %s32_s25, 14336  ;;  %p3329_p4 = scmp.lt.s32.totalorder %s32_s25, %s32_s25 }
   0xb   :  { %p3325_p3 = scmp.ne.s32.totalorder %s32_s25, %s3324_s10  ;;  %p3330_p5 = scmp.lt.s32.totalorder %s3324_s10, %s3324_s10 }
   0xd   :  { %p3331_p6 = por %p3330_p5, %p3329_p4 }
   0xf   :  { %p3332_p7 = pnand %p3331_p6, %p3325_p3 }
  0x11   :  { %3335 = shalt.err (!%p3332_p7)
}
  0x12   :  { %s3433_s11 = smov 128   ;;  %s3434_s12 = smov 8  }
  0x13   :  { %37 = dma.hbm_to_vmem [thread:$0]  %s3606_s1, 14336, %s32_s25, [#allocation6], %s3433_s11, %s3433_s11, %s3434_s12  }
  0x14   :  { %s3435_s15 = smov [#allocation2]   ;;  %s3436_s17 = smov [#allocation7]  }
  0x15   :  { %s22_s16 = sshll.u32 %s3435_s15, 4  ;;  %s45_s18 = sshll.u32 %s3436_s17, 4  ;;  %s23_s16 = int_to_ptr.vmem [resolvable:$true] %s22_s16  ;;  %s46_s18 = int_to_ptr.vmem [resolvable:$true] %s45_s18 }
  0x16   :  { %s3336_s21 = scalar_lea.hbm %s3605_s0, 448 }
  0x17   :  { %p3337_p8 = scmp.ne.s32.totalorder %s3605_s0, %s3336_s21  ;;  %p3340_p9 = scmp.lt.u32.totalorder %s3336_s21, %s3605_s0 }
  0x19   :  { %p3342_p10 = pnand %p3340_p9, %p3337_p8 }
  0x1b   :  { %3345 = shalt.err (!%p3342_p10)
}
  0x1c   :  { %s3346_s1 = scalar_lea.vmem %s23_s16, 448  ;;  %p3351_p12 = scmp.lt.s32.totalorder %s23_s16, %s23_s16 }
  0x1d   :  { %p3347_p11 = scmp.ne.s32.totalorder %s23_s16, %s3346_s1  ;;  %p3352_p13 = scmp.lt.s32.totalorder %s3346_s1, %s3346_s1 }
  0x1f   :  { %p3353_p0 = por %p3352_p13, %p3351_p12 }
  0x21   :  { %p3354_p1 = pnand %p3353_p0, %p3347_p11 }
  0x23   :  { %3357 = shalt.err (!%p3354_p1)
}
  0x24   :  { %25 = dma.hbm_to_vmem [thread:$0]  %s3605_s0, 448, %s23_s16, [#allocation3]  }
  0x25   :  { %s3358_s30 = scalar_lea.hbm %s3608_s3, 16384 }
  0x26   :  { %p3359_p2 = scmp.ne.s32.totalorder %s3608_s3, %s3358_s30  ;;  %p3362_p3 = scmp.lt.u32.totalorder %s3358_s30, %s3608_s3 }
  0x28   :  { %p3364_p4 = pnand %p3362_p3, %p3359_p2 }
  0x2a   :  { %3367 = shalt.err (!%p3364_p4)
}
  0x2b   :  { %s3368_s12 = scalar_lea.vmem %s46_s18, 16384  ;;  %p3373_p6 = scmp.lt.s32.totalorder %s46_s18, %s46_s18 }
  0x2c   :  { %p3369_p5 = scmp.ne.s32.totalorder %s46_s18, %s3368_s12  ;;  %p3374_p7 = scmp.lt.s32.totalorder %s3368_s12, %s3368_s12 }
  0x2e   :  { %p3375_p8 = por %p3374_p7, %p3373_p6 }
  0x30   :  { %p3376_p9 = pnand %p3375_p8, %p3369_p5 }
  0x32   :  { %3379 = shalt.err (!%p3376_p9)
}
  0x33   :  { %s3437_s0 = smov 512   ;;  %s3438_s13 = smov 32  }
  0x34   :  { %51 = dma.hbm_to_vmem [thread:$0]  %s3608_s3, 16384, %s46_s18, [#allocation6], %s3437_s0, %s3437_s0, %s3438_s13  }
  0x35   :  { %s3439_s16 = smov [#allocation8]   ;;  %s3380_s21 = scalar_lea.hbm %s3610_s5, 8192 }
  0x36   :  { %s59_s17 = sshll.u32 %s3439_s16, 4  ;;  %p3381_p10 = scmp.ne.s32.totalorder %s3610_s5, %s3380_s21  ;;  %s60_s17 = int_to_ptr.vmem [resolvable:$true] %s59_s17 }
  0x37   :  { %p3384_p11 = scmp.lt.u32.totalorder %s3380_s21, %s3610_s5 }
  0x39   :  { %p3386_p12 = pnand %p3384_p11, %p3381_p10 }
  0x3b   :  { %3389 = shalt.err (!%p3386_p12)
}
  0x3c   :  { %s3390_s1 = scalar_lea.vmem %s60_s17, 8192  ;;  %p3395_p0 = scmp.lt.s32.totalorder %s60_s17, %s60_s17 }
  0x3d   :  { %p3391_p13 = scmp.ne.s32.totalorder %s60_s17, %s3390_s1  ;;  %p3396_p1 = scmp.lt.s32.totalorder %s3390_s1, %s3390_s1 }
  0x3f   :  { %p3397_p2 = por %p3396_p1, %p3395_p0 }
  0x41   :  { %p3398_p3 = pnand %p3397_p2, %p3391_p13 }
  0x43   :  { %3401 = shalt.err (!%p3398_p3)
}
  0x44   :  { %s3440_s3 = smov 64   ;;  %s3441_s18 = smov 4  }
  0x45   :  { %65 = dma.hbm_to_vmem [thread:$0]  %s3610_s5, 8192, %s60_s17, [#allocation9], %s3440_s3, %s3440_s3, %s3441_s18  }
  0x46   :  { %3424 = dma.done.wait [#allocation3], 448  }
  0x47   :  { %3425 = vsyncadd [#allocation3], 4294966848 }
  0x48   :  { %3426 = dma.done.wait [#allocation6], 30720  }
  0x49   :  { %3427 = vsyncadd [#allocation6], 4294936576 }
  0x4a   :  { %3428 = dma.done.wait [#allocation9], 8192  }
  0x4b   :  { %3429 = vsyncadd [#allocation9], 4294959104  ;;  %v3075_v0 = vld [vmem:[#allocation5 + $0x4] ss:$8 sps:$4 sm:$0xff]   ;;  %v3077_v1 = vld [vmem:[#allocation5] ss:$8 sps:$4 sm:$0xff]  }
  0x4c   :  { %794 = vmatprep.subr.bf16.mxu0 %v3075_v0  ;;  %v3078_v2 = vld [vmem:[#allocation5 + $0x14] ss:$8 sps:$4 sm:$0xff]   ;;  %v3080_v3 = vld [vmem:[#allocation5 + $0x10] ss:$8 sps:$4 sm:$0xff]   ;;  %v3081_v4 = vld [vmem:[#allocation5 + $0x24] ss:$8 sps:$4 sm:$0xff]  }
  0x4d   :  { %795 = vmatpush1.bf16.msra.mxu0 %v3077_v1  ;;  %v3083_v5 = vld [vmem:[#allocation5 + $0x20] ss:$8 sps:$4 sm:$0xff]   ;;  %v3084_v6 = vld [vmem:[#allocation5 + $0x34] ss:$8 sps:$4 sm:$0xff]   ;;  %v3086_v7 = vld [vmem:[#allocation5 + $0x30] ss:$8 sps:$4 sm:$0xff]  }
  0x4e   :  { %796 = vmatprep.subr.bf16.mxu0 %v3078_v2  ;;  %v3087_v8 = vld [vmem:[#allocation5 + $0x44] ss:$8 sps:$4 sm:$0xff]   ;;  %v3089_v9 = vld [vmem:[#allocation5 + $0x40] ss:$8 sps:$4 sm:$0xff]   ;;  %v3090_v10 = vld [vmem:[#allocation5 + $0x54] ss:$8 sps:$4 sm:$0xff]  }
  0x4f   :  { %v3092_v11 = vld [vmem:[#allocation5 + $0x50] ss:$8 sps:$4 sm:$0xff]   ;;  %v3093_v12 = vld [vmem:[#allocation5 + $0x64] ss:$8 sps:$4 sm:$0xff]   ;;  %v3095_v15 = vld [vmem:[#allocation5 + $0x60] ss:$8 sps:$4 sm:$0xff]  }
  0x50   :  { %v81_v13 = vld [vmem:[#allocation2] sm:$0xff]  ;;  %v3096_v16 = vld [vmem:[#allocation5 + $0x74] ss:$8 sps:$4 sm:$0xff]   ;;  %v3098_v17 = vld [vmem:[#allocation5 + $0x70] ss:$8 sps:$4 sm:$0xff]   ;;  %s3443_s8 = smov [#allocation10]  }
  0x51   :  { %797 = vmatpush1.bf16.msra.mxu0 %v3080_v3  ;;  %v2650_v14 = vcombine.high %v81_v13, %v81_v13  ;;  %v3099_v18 = vld [vmem:[#allocation5 + $0x84] ss:$8 sps:$4 sm:$0xff]   ;;  %v3101_v19 = vld [vmem:[#allocation5 + $0x80] ss:$8 sps:$4 sm:$0xff]   ;;  %v3102_v20 = vld [vmem:[#allocation5 + $0x94] ss:$8 sps:$4 sm:$0xff]   ;;  %v2649_v36 = vcombine.low %v81_v13, %v81_v13 }
  0x52   :  { %798 = vmatprep.subr.bf16.mxu0 %v3081_v4  ;;  %v3104_v21 = vld [vmem:[#allocation5 + $0x90] ss:$8 sps:$4 sm:$0xff]   ;;  %v3105_v22 = vld [vmem:[#allocation5 + $0xa4] ss:$8 sps:$4 sm:$0xff]   ;;  %v3107_v23 = vld [vmem:[#allocation5 + $0xa0] ss:$8 sps:$4 sm:$0xff]  }
  0x53   :  { %826 = vmatprep.mubr.bf16.mxu0 %v2650_v14  ;;  %v3108_v24 = vld [vmem:[#allocation5 + $0xb4] ss:$8 sps:$4 sm:$0xff]   ;;  %v3110_v25 = vld [vmem:[#allocation5 + $0xb0] ss:$8 sps:$4 sm:$0xff]   ;;  %v3111_v26 = vld [vmem:[#allocation5 + $0xc4] ss:$8 sps:$4 sm:$0xff]  }
  0x54   :  { %v3113_v27 = vld [vmem:[#allocation5 + $0xc0] ss:$8 sps:$4 sm:$0xff]   ;;  %v3114_v28 = vld [vmem:[#allocation5 + $0xd4] ss:$8 sps:$4 sm:$0xff]   ;;  %v3116_v29 = vld [vmem:[#allocation5 + $0xd0] ss:$8 sps:$4 sm:$0xff]  }
  0x55   :  { %799 = vmatpush1.bf16.msra.mxu0 %v3083_v5  ;;  %v3117_v30 = vld [vmem:[#allocation5 + $0xe4] ss:$8 sps:$4 sm:$0xff]   ;;  %v3119_v31 = vld [vmem:[#allocation5 + $0xe0] ss:$8 sps:$4 sm:$0xff]   ;;  %v3120_v32 = vld [vmem:[#allocation5 + $0xf4] ss:$8 sps:$4 sm:$0xff]  }
  0x56   :  { %800 = vmatprep.subr.bf16.mxu0 %v3084_v6  ;;  %v3122_v33 = vld [vmem:[#allocation5 + $0xf0] ss:$8 sps:$4 sm:$0xff]   ;;  %v3127_v34 = vld [vmem:[#allocation5 + $0x104] ss:$8 sps:$4 sm:$0xff]   ;;  %v3125_v37 = vld [vmem:[#allocation5 + $0x100] ss:$8 sps:$4 sm:$0xff]  }
  0x57   :  { %v3532_v35 = vld [vmem:[#allocation2 + $0x8] sm:$0xff]  ;;  %v3130_v39 = vld [vmem:[#allocation5 + $0x114] ss:$8 sps:$4 sm:$0xff]   ;;  %v3131_v42 = vld [vmem:[#allocation5 + $0x120] ss:$8 sps:$4 sm:$0xff]   ;;  %s2638_s9 = sshll.u32 %s3443_s8, 4  ;;  %s2639_s9 = int_to_ptr.vmem [resolvable:$true] %s2638_s9 }
  0x58   :  { %v2652_v38 = vcombine.high %v3532_v35, %v3532_v35  ;;  %v3128_v40 = vld [vmem:[#allocation5 + $0x110] ss:$8 sps:$4 sm:$0xff]   ;;  %v3133_v41 = vld [vmem:[#allocation5 + $0x124] ss:$8 sps:$4 sm:$0xff]   ;;  %v3136_v43 = vld [vmem:[#allocation5 + $0x134] ss:$8 sps:$4 sm:$0xff]   ;;  %p3407_p5 = scmp.lt.s32.totalorder %s2639_s9, %s2639_s9 }
  0x59   :  { %801 = vmatpush1.bf16.msra.mxu0 %v3086_v7  ;;  %v3134_v44 = vld [vmem:[#allocation5 + $0x130] ss:$8 sps:$4 sm:$0xff]   ;;  %v3139_v45 = vld [vmem:[#allocation5 + $0x144] ss:$8 sps:$4 sm:$0xff]   ;;  %v3137_v46 = vld [vmem:[#allocation5 + $0x140] ss:$8 sps:$4 sm:$0xff]  }
  0x5a   :  { %802 = vmatprep.subr.bf16.mxu0 %v3087_v8  ;;  %v3142_v47 = vld [vmem:[#allocation5 + $0x154] ss:$8 sps:$4 sm:$0xff]   ;;  %v3140_v48 = vld [vmem:[#allocation5 + $0x150] ss:$8 sps:$4 sm:$0xff]   ;;  %v3145_v49 = vld [vmem:[#allocation5 + $0x164] ss:$8 sps:$4 sm:$0xff]  }
  0x5b   :  { %v3143_v50 = vld [vmem:[#allocation5 + $0x160] ss:$8 sps:$4 sm:$0xff]   ;;  %v3148_v51 = vld [vmem:[#allocation5 + $0x174] ss:$8 sps:$4 sm:$0xff]   ;;  %v3146_v52 = vld [vmem:[#allocation5 + $0x170] ss:$8 sps:$4 sm:$0xff]  }
  0x5c   :  { %v3151_v53 = vld [vmem:[#allocation5 + $0x184] ss:$8 sps:$4 sm:$0xff]   ;;  %v3149_v54 = vld [vmem:[#allocation5 + $0x180] ss:$8 sps:$4 sm:$0xff]   ;;  %v3154_v55 = vld [vmem:[#allocation5 + $0x194] ss:$8 sps:$4 sm:$0xff]  }
  0x5d   :  { %803 = vmatpush1.bf16.msra.mxu0 %v3089_v9  ;;  %v962_v56 = vld [vmem:[#allocation7] sm:$0xff]  ;;  %v3152_v59 = vld [vmem:[#allocation5 + $0x190] ss:$8 sps:$4 sm:$0xff]   ;;  %v3160_v6 = vld [vmem:[#allocation5 + $0x1b4] ss:$8 sps:$4 sm:$0xff]  }
  0x5e   :  { %804 = vmatprep.subr.bf16.mxu0 %v3090_v10  ;;  %v966_v57 = vld [vmem:[#allocation7 + $0x20] sm:$0xff]  ;;  %v3158_v9 = vld [vmem:[#allocation5 + $0x1b0] ss:$8 sps:$4 sm:$0xff]  }
  0x5f   :  { %v970_v58 = vld [vmem:[#allocation7 + $0x40] sm:$0xff]  ;;  %v2769_v60 = vcombine.high %v962_v56, %v966_v57  ;;  %v2768_v61 = vcombine.low %v962_v56, %v966_v57  ;;  %v3186_v57 = vld [vmem:[#allocation5 + $0x234] ss:$8 sps:$4 sm:$0xff]  }
  0x60   :  { %v974_v62 = vld [vmem:[#allocation7 + $0x60] sm:$0xff] }
  0x61   :  { %805 = vmatpush1.bf16.msra.mxu0 %v3092_v11  ;;  %v3157_v63 = vld [vmem:[#allocation5 + $0x1a4] ss:$8 sps:$4 sm:$0xff]   ;;  %v2777_v0 = vcombine.high %v970_v58, %v974_v62  ;;  %1772 = vmatprep.subr.bf16.mxu1 %v2769_v60  ;;  %v2776_v3 = vcombine.low %v970_v58, %v974_v62  ;;  %v3155_v4 = vld [vmem:[#allocation5 + $0x1a0] ss:$8 sps:$4 sm:$0xff]  }
  0x62   :  { %806 = vmatprep.subr.bf16.mxu0 %v3093_v12  ;;  %v978_v1 = vld [vmem:[#allocation7 + $0x80] sm:$0xff]  ;;  %1773 = vmatpush1.bf16.msra.mxu1 %v2768_v61  ;;  %v3184_v61 = vld [vmem:[#allocation5 + $0x230] ss:$8 sps:$4 sm:$0xff]  }
  0x63   :  { %v982_v2 = vld [vmem:[#allocation7 + $0xa0] sm:$0xff]  ;;  %1774 = vmatprep.subr.bf16.mxu1 %v2777_v0 }
  0x64   :  { %v2785_v5 = vcombine.high %v978_v1, %v982_v2  ;;  %v986_v7 = vld [vmem:[#allocation7 + $0xc0] sm:$0xff]  ;;  %v2784_v11 = vcombine.low %v978_v1, %v982_v2 }
  0x65   :  { %807 = vmatpush1.bf16.msra.mxu0 %v3095_v15  ;;  %v990_v8 = vld [vmem:[#allocation7 + $0xe0] sm:$0xff] }
  0x66   :  { %808 = vmatprep.subr.bf16.mxu0 %v3096_v16  ;;  %v3163_v10 = vld [vmem:[#allocation5 + $0x1c4] ss:$8 sps:$4 sm:$0xff]   ;;  %1775 = vmatpush1.bf16.msra.mxu1 %v2776_v3  ;;  %v2793_v12 = vcombine.high %v986_v7, %v990_v8  ;;  %v3161_v15 = vld [vmem:[#allocation5 + $0x1c0] ss:$8 sps:$4 sm:$0xff]   ;;  %v3166_v16 = vld [vmem:[#allocation5 + $0x1d4] ss:$8 sps:$4 sm:$0xff]  }
  0x67   :  { %1776 = vmatprep.subr.bf16.mxu1 %v2785_v5  ;;  %v994_v13 = vld [vmem:[#allocation7 + $0x100] sm:$0xff]  ;;  %v3192_v5 = vld [vmem:[#allocation5 + $0x254] ss:$8 sps:$4 sm:$0xff]  }
  0x68   :  { %v998_v14 = vld [vmem:[#allocation7 + $0x120] sm:$0xff] }
  0x69   :  { %809 = vmatpush1.bf16.msra.mxu0 %v3098_v17  ;;  %v2792_v17 = vcombine.low %v986_v7, %v990_v8  ;;  %v1050_v58 = vld [vmem:[#allocation7 + $0x2c0] sm:$0xff] }
  0x6a   :  { %810 = vmatprep.subr.bf16.mxu0 %v3099_v18  ;;  %1777 = vmatpush1.bf16.msra.mxu1 %v2784_v11  ;;  %v1002_v18 = vld [vmem:[#allocation7 + $0x140] sm:$0xff] }
  0x6b   :  { %1778 = vmatprep.subr.bf16.mxu1 %v2793_v12  ;;  %v1058_v0 = vld [vmem:[#allocation7 + $0x300] sm:$0xff] }
  0x6c   :  { %v1062_v1 = vld [vmem:[#allocation7 + $0x320] sm:$0xff] }
  0x6d   :  { %811 = vmatpush1.bf16.msra.mxu0 %v3101_v19  ;;  %v1006_v19 = vld [vmem:[#allocation7 + $0x160] sm:$0xff]  ;;  %v2864_v8 = vcombine.low %v1058_v0, %v1062_v1 }
  0x6e   :  { %812 = vmatprep.subr.bf16.mxu0 %v3102_v20  ;;  %v2801_v20 = vcombine.high %v994_v13, %v998_v14  ;;  %1779 = vmatpush1.bf16.msra.mxu1 %v2792_v17  ;;  %v3187_v3 = vld [vmem:[#allocation5 + $0x240] ss:$8 sps:$4 sm:$0xff]   ;;  %v3195_v11 = vld [vmem:[#allocation5 + $0x264] ss:$8 sps:$4 sm:$0xff]  }
  0x6f   :  { %v1070_v7 = vld [vmem:[#allocation7 + $0x360] sm:$0xff] }
  0x70   :  { %1780 = vmatprep.subr.bf16.mxu1 %v2801_v20  ;;  %v3199_v17 = vld [vmem:[#allocation5 + $0x280] ss:$8 sps:$4 sm:$0xff]   ;;  %v3207_v20 = vld [vmem:[#allocation5 + $0x2a4] ss:$8 sps:$4 sm:$0xff]  }
  0x71   :  { %813 = vmatpush1.bf16.msra.mxu0 %v3104_v21  ;;  %v3164_v21 = vld [vmem:[#allocation5 + $0x1d0] ss:$8 sps:$4 sm:$0xff]  }
  0x72   :  { %814 = vmatprep.subr.bf16.mxu0 %v3105_v22  ;;  %v3169_v22 = vld [vmem:[#allocation5 + $0x1e4] ss:$8 sps:$4 sm:$0xff]  }
  0x75   :  { %815 = vmatpush1.bf16.msra.mxu0 %v3107_v23  ;;  %v2800_v23 = vcombine.low %v994_v13, %v998_v14  ;;  %v3193_v13 = vld [vmem:[#allocation5 + $0x260] ss:$8 sps:$4 sm:$0xff]   ;;  %v3198_v14 = vld [vmem:[#allocation5 + $0x274] ss:$8 sps:$4 sm:$0xff]  }
  0x76   :  { %816 = vmatprep.subr.bf16.mxu0 %v3108_v24  ;;  %v1010_v24 = vld [vmem:[#allocation7 + $0x180] sm:$0xff] }
  0x77   :  { %1781 = vmatpush1.bf16.msra.mxu1 %v2800_v23  ;;  %v3208_v23 = vld [vmem:[#allocation5 + $0x2b0] ss:$8 sps:$4 sm:$0xff]  }
  0x79   :  { %817 = vmatpush1.bf16.msra.mxu0 %v3110_v25  ;;  %v1014_v25 = vld [vmem:[#allocation7 + $0x1a0] sm:$0xff] }
  0x7a   :  { %818 = vmatprep.subr.bf16.mxu0 %v3111_v26  ;;  %v2809_v26 = vcombine.high %v1002_v18, %v1006_v19 }
  0x7c   :  { %1782 = vmatprep.subr.bf16.mxu1 %v2809_v26  ;;  %v3216_v26 = vld [vmem:[#allocation5 + $0x2d4] ss:$8 sps:$4 sm:$0xff]  }
  0x7d   :  { %819 = vmatpush1.bf16.msra.mxu0 %v3113_v27  ;;  %v3167_v27 = vld [vmem:[#allocation5 + $0x1e0] ss:$8 sps:$4 sm:$0xff]  }
  0x7e   :  { %820 = vmatprep.subr.bf16.mxu0 %v3114_v28  ;;  %v3172_v28 = vld [vmem:[#allocation5 + $0x1f4] ss:$8 sps:$4 sm:$0xff]  }
  0x81   :  { %821 = vmatpush1.bf16.msra.mxu0 %v3116_v29  ;;  %v2808_v29 = vcombine.low %v1002_v18, %v1006_v19  ;;  %v3204_v18 = vld [vmem:[#allocation5 + $0x294] ss:$8 sps:$4 sm:$0xff]   ;;  %v3202_v19 = vld [vmem:[#allocation5 + $0x290] ss:$8 sps:$4 sm:$0xff]  }
  0x82   :  { %822 = vmatprep.subr.bf16.mxu0 %v3117_v30  ;;  %v1018_v30 = vld [vmem:[#allocation7 + $0x1c0] sm:$0xff] }
  0x83   :  { %1783 = vmatpush1.bf16.msra.mxu1 %v2808_v29  ;;  %v3217_v29 = vld [vmem:[#allocation5 + $0x2e0] ss:$8 sps:$4 sm:$0xff]  }
  0x85   :  { %823 = vmatpush1.bf16.msra.mxu0 %v3119_v31  ;;  %v1022_v31 = vld [vmem:[#allocation7 + $0x1e0] sm:$0xff] }
  0x86   :  { %824 = vmatprep.subr.bf16.mxu0 %v3120_v32  ;;  %v2817_v32 = vcombine.high %v1010_v24, %v1014_v25 }
  0x88   :  { %1784 = vmatprep.subr.bf16.mxu1 %v2817_v32  ;;  %v3227_v32 = vld [vmem:[#allocation5 + $0x304] ss:$8 sps:$4 sm:$0xff]  }
  0x89   :  { %825 = vmatpush1.bf16.msra.mxu0 %v3122_v33  ;;  %v3170_v33 = vld [vmem:[#allocation5 + $0x1f0] ss:$8 sps:$4 sm:$0xff]  }
  0x8a   :  { %835 = vmatprep.subr.bf16.mxu0 %v3127_v34  ;;  %v3177_v34 = vld [vmem:[#allocation5 + $0x204] ss:$8 sps:$4 sm:$0xff]  }
  0x8c   :  { %827 = vmatmul.mubr.bf16.vlgmr.msra.gmra.mrb[0].mxu0 %v2649_v36  ;;  %v3536_v36 = vld [vmem:[#allocation2 + $0x10] sm:$0xff] }
  0x8d   :  { %836 = vmatpush1.bf16.msra.mxu0 %v3125_v37  ;;  %867 = vmatprep.mubr.bf16.mxu0 %v2652_v38  ;;  %v2816_v37 = vcombine.low %v1010_v24, %v1014_v25  ;;  %v2825_v38 = vcombine.high %v1018_v30, %v1022_v31  ;;  %v3213_v24 = vld [vmem:[#allocation5 + $0x2c4] ss:$8 sps:$4 sm:$0xff]   ;;  %v3211_v25 = vld [vmem:[#allocation5 + $0x2c0] ss:$8 sps:$4 sm:$0xff]  }
  0x8e   :  { %837 = vmatprep.subr.bf16.mxu0 %v3130_v39  ;;  %v1026_v39 = vld [vmem:[#allocation7 + $0x200] sm:$0xff] }
  0x8f   :  { %1785 = vmatpush1.bf16.msra.mxu1 %v2816_v37  ;;  %v3230_v37 = vld [vmem:[#allocation5 + $0x314] ss:$8 sps:$4 sm:$0xff]  }
  0x90   :  { %1786 = vmatprep.subr.bf16.mxu1 %v2825_v38  ;;  %v3228_v38 = vld [vmem:[#allocation5 + $0x310] ss:$8 sps:$4 sm:$0xff]  }
  0x91   :  { %838 = vmatpush1.bf16.msra.mxu0 %v3128_v40  ;;  %v1030_v40 = vld [vmem:[#allocation7 + $0x220] sm:$0xff] }
  0x92   :  { %839 = vmatprep.subr.bf16.mxu0 %v3133_v41  ;;  %v3175_v41 = vld [vmem:[#allocation5 + $0x200] ss:$8 sps:$4 sm:$0xff]  }
  0x95   :  { %840 = vmatpush1.bf16.msra.mxu0 %v3131_v42  ;;  %v2651_v42 = vcombine.low %v3532_v35, %v3532_v35  ;;  %v3183_v35 = vld [vmem:[#allocation5 + $0x224] ss:$8 sps:$4 sm:$0xff]  }
  0x96   :  { %841 = vmatprep.subr.bf16.mxu0 %v3136_v43  ;;  %v3180_v43 = vld [vmem:[#allocation5 + $0x214] ss:$8 sps:$4 sm:$0xff]  }
  0x99   :  { %842 = vmatpush1.bf16.msra.mxu0 %v3134_v44  ;;  %v2824_v44 = vcombine.low %v1018_v30, %v1022_v31  ;;  %v3222_v30 = vld [vmem:[#allocation5 + $0x2f4] ss:$8 sps:$4 sm:$0xff]   ;;  %v3220_v31 = vld [vmem:[#allocation5 + $0x2f0] ss:$8 sps:$4 sm:$0xff]  }
  0x9a   :  { %843 = vmatprep.subr.bf16.mxu0 %v3139_v45  ;;  %v1034_v45 = vld [vmem:[#allocation7 + $0x240] sm:$0xff] }
  0x9b   :  { %1787 = vmatpush1.bf16.msra.mxu1 %v2824_v44  ;;  %v3239_v44 = vld [vmem:[#allocation5 + $0x344] ss:$8 sps:$4 sm:$0xff]  }
  0x9d   :  { %844 = vmatpush1.bf16.msra.mxu0 %v3137_v46  ;;  %v1038_v46 = vld [vmem:[#allocation7 + $0x260] sm:$0xff] }
  0x9e   :  { %845 = vmatprep.subr.bf16.mxu0 %v3142_v47  ;;  %v2654_v47 = vcombine.high %v3536_v36, %v3536_v36 }
  0xa1   :  { %846 = vmatpush1.bf16.msra.mxu0 %v3140_v48  ;;  %v2833_v48 = vcombine.high %v1026_v39, %v1030_v40 }
  0xa2   :  { %847 = vmatprep.subr.bf16.mxu0 %v3145_v49  ;;  %v2832_v49 = vcombine.low %v1026_v39, %v1030_v40  ;;  %v3442_v39 = vmov 0   ;;  %v3233_v40 = vld [vmem:[#allocation5 + $0x324] ss:$8 sps:$4 sm:$0xff]  }
  0xa3   :  { %1788 = vmatprep.subr.bf16.mxu1 %v2833_v48  ;;  %v3243_v48 = vld [vmem:[#allocation5 + $0x360] ss:$8 sps:$4 sm:$0xff]  }
  0xa4   :  { %1789 = vmatpush1.bf16.msra.mxu1 %v2832_v49  ;;  %v3248_v49 = vld [vmem:[#allocation5 + $0x374] ss:$8 sps:$4 sm:$0xff]  }
  0xa5   :  { %848 = vmatpush1.bf16.msra.mxu0 %v3143_v50  ;;  %v3178_v50 = vld [vmem:[#allocation5 + $0x210] ss:$8 sps:$4 sm:$0xff]  }
  0xa6   :  { %849 = vmatprep.subr.bf16.mxu0 %v3148_v51  ;;  %v2841_v51 = vcombine.high %v1034_v45, %v1038_v46 }
  0xa8   :  { %1790 = vmatprep.subr.bf16.mxu1 %v2841_v51  ;;  %v3249_v51 = vld [vmem:[#allocation2 + $0x18] ss:$0 sps:$4 sm:$0xff]  }
  0xa9   :  { %850 = vmatpush1.bf16.msra.mxu0 %v3146_v52  ;;  %v1042_v52 = vld [vmem:[#allocation7 + $0x280] sm:$0xff] }
  0xaa   :  { %851 = vmatprep.subr.bf16.mxu0 %v3151_v53  ;;  %v1046_v53 = vld [vmem:[#allocation7 + $0x2a0] sm:$0xff] }
  0xab   :  { %v2849_v56 = vcombine.high %v1042_v52, %v1046_v53  ;;  %v2848_v60 = vcombine.low %v1042_v52, %v1046_v53  ;;  %v1078_v52 = vld [vmem:[#allocation7 + $0x3a0] sm:$0xff] }
  0xad   :  { %852 = vmatpush1.bf16.msra.mxu0 %v3149_v54  ;;  %v2840_v54 = vcombine.low %v1034_v45, %v1038_v46  ;;  %v3242_v45 = vld [vmem:[#allocation5 + $0x354] ss:$8 sps:$4 sm:$0xff]   ;;  %v3240_v46 = vld [vmem:[#allocation5 + $0x350] ss:$8 sps:$4 sm:$0xff]  }
  0xae   :  { %853 = vmatprep.subr.bf16.mxu0 %v3154_v55  ;;  %v3181_v55 = vld [vmem:[#allocation5 + $0x220] ss:$8 sps:$4 sm:$0xff]  }
  0xaf   :  { %1791 = vmatpush1.bf16.msra.mxu1 %v2840_v54 }
  0xb0   :  { %1792 = vmatprep.subr.bf16.mxu1 %v2849_v56  ;;  %v1086_v56 = vld [vmem:[#allocation7 + $0x3e0] sm:$0xff] }
  0xb1   :  { %854 = vmatpush1.bf16.msra.mxu0 %v3152_v59  ;;  %v1054_v59 = vld [vmem:[#allocation7 + $0x2e0] sm:$0xff] }
  0xb2   :  { %855 = vmatprep.subr.bf16.mxu0 %v3157_v63  ;;  %v2857_v62 = vcombine.high %v1050_v58, %v1054_v59  ;;  %v3189_v63 = vld [vmem:[#allocation5 + $0x244] ss:$8 sps:$4 sm:$0xff]   ;;  %v2856_v2 = vcombine.low %v1050_v58, %v1054_v59 }
  0xb3   :  { %1793 = vmatpush1.bf16.msra.mxu1 %v2848_v60  ;;  %v963_v59 = vld [vmem:[#allocation7 + $0x8] sm:$0xff] }
  0xb4   :  { %1794 = vmatprep.subr.bf16.mxu1 %v2857_v62  ;;  %v967_v60 = vld [vmem:[#allocation7 + $0x28] sm:$0xff] }
  0xb5   :  { %856 = vmatpush1.bf16.msra.mxu0 %v3155_v4  ;;  %v2865_v4 = vcombine.high %v1058_v0, %v1062_v1  ;;  %v2770_v62 = vcombine.low %v963_v59, %v967_v60 }
  0xb6   :  { %857 = vmatprep.subr.bf16.mxu0 %v3160_v6  ;;  %v1066_v6 = vld [vmem:[#allocation7 + $0x340] sm:$0xff] }
  0xb7   :  { %1795 = vmatpush1.bf16.msra.mxu1 %v2856_v2  ;;  %v2872_v12 = vcombine.low %v1066_v6, %v1070_v7  ;;  %v197_v2 = vld [vmem:[%s3607_s2] sm:$0x3] }
  0xb8   :  { %1796 = vmatprep.subr.bf16.mxu1 %v2865_v4 }
  0xb9   :  { %858 = vmatpush1.bf16.msra.mxu0 %v3158_v9  ;;  %v3190_v9 = vld [vmem:[#allocation5 + $0x250] ss:$8 sps:$4 sm:$0xff]  }
  0xba   :  { %859 = vmatprep.subr.bf16.mxu0 %v3163_v10  ;;  %v2873_v10 = vcombine.high %v1066_v6, %v1070_v7 }
  0xbb   :  { %1797 = vmatpush1.bf16.msra.mxu1 %v2864_v8 }
  0xbc   :  { %1798 = vmatprep.subr.bf16.mxu1 %v2873_v10 }
  0xbd   :  { %860 = vmatpush1.bf16.msra.mxu0 %v3161_v15  ;;  %v3196_v15 = vld [vmem:[#allocation5 + $0x270] ss:$8 sps:$4 sm:$0xff]  }
  0xbe   :  { %861 = vmatprep.subr.bf16.mxu0 %v3166_v16  ;;  %v3201_v16 = vld [vmem:[#allocation5 + $0x284] ss:$8 sps:$4 sm:$0xff]  }
  0xbf   :  { %1799 = vmatpush1.bf16.msra.mxu1 %v2872_v12 }
  0xc1   :  { %862 = vmatpush1.bf16.msra.mxu0 %v3164_v21  ;;  %v3205_v21 = vld [vmem:[#allocation5 + $0x2a0] ss:$8 sps:$4 sm:$0xff]  }
  0xc2   :  { %863 = vmatprep.subr.bf16.mxu0 %v3169_v22  ;;  %v3210_v22 = vld [vmem:[#allocation5 + $0x2b4] ss:$8 sps:$4 sm:$0xff]  }
  0xc5   :  { %864 = vmatpush1.bf16.msra.mxu0 %v3167_v27  ;;  %v3214_v27 = vld [vmem:[#allocation5 + $0x2d0] ss:$8 sps:$4 sm:$0xff]  }
  0xc6   :  { %865 = vmatprep.subr.bf16.mxu0 %v3172_v28  ;;  %v3219_v28 = vld [vmem:[#allocation5 + $0x2e4] ss:$8 sps:$4 sm:$0xff]  }
  0xc9   :  { %866 = vmatpush1.bf16.msra.mxu0 %v3170_v33  ;;  %v2653_v33 = vcombine.low %v3536_v36, %v3536_v36  ;;  %v3237_v36 = vld [vmem:[#allocation5 + $0x340] ss:$8 sps:$4 sm:$0xff]  }
  0xca   :  { %876 = vmatprep.subr.bf16.mxu0 %v3177_v34  ;;  %v3225_v34 = vld [vmem:[#allocation5 + $0x300] ss:$8 sps:$4 sm:$0xff]  }
  0xcc   :  { %868 = vmatmul.mubr.bf16.vlgmr.msra.gmra.mrb[0].mxu0 %v2651_v42  ;;  %v3236_v42 = vld [vmem:[#allocation5 + $0x334] ss:$8 sps:$4 sm:$0xff]  }
  0xcd   :  { %877 = vmatpush1.bf16.msra.mxu0 %v3175_v41  ;;  %908 = vmatprep.mubr.bf16.mxu0 %v2654_v47  ;;  %v3231_v41 = vld [vmem:[#allocation5 + $0x320] ss:$8 sps:$4 sm:$0xff]   ;;  %v3245_v47 = vld [vmem:[#allocation5 + $0x364] ss:$8 sps:$4 sm:$0xff]  }
  0xce   :  { %878 = vmatprep.subr.bf16.mxu0 %v3180_v43  ;;  %v3234_v43 = vld [vmem:[#allocation5 + $0x330] ss:$8 sps:$4 sm:$0xff]  }
  0xd1   :  { %879 = vmatpush1.bf16.msra.mxu0 %v3178_v50  ;;  %v3246_v50 = vld [vmem:[#allocation5 + $0x370] ss:$8 sps:$4 sm:$0xff]  }
  0xd2   :  { %880 = vmatprep.subr.bf16.mxu0 %v3183_v35  ;;  %v1074_v35 = vld [vmem:[#allocation7 + $0x380] sm:$0xff] }
  0xd3   :  { %v2881_v53 = vcombine.high %v1074_v35, %v1078_v52  ;;  %v2880_v54 = vcombine.low %v1074_v35, %v1078_v52  ;;  %v1043_v35 = vld [vmem:[#allocation7 + $0x288] sm:$0xff] }
  0xd4   :  { %v1047_v52 = vld [vmem:[#allocation7 + $0x2a8] sm:$0xff] }
  0xd5   :  { %881 = vmatpush1.bf16.msra.mxu0 %v3181_v55  ;;  %1800 = vmatprep.subr.bf16.mxu1 %v2881_v53  ;;  %v1082_v55 = vld [vmem:[#allocation7 + $0x3c0] sm:$0xff] }
  0xd6   :  { %882 = vmatprep.subr.bf16.mxu0 %v3186_v57  ;;  %1801 = vmatpush1.bf16.msra.mxu1 %v2880_v54  ;;  %v2889_v57 = vcombine.high %v1082_v55, %v1086_v56  ;;  %v2888_v58 = vcombine.low %v1082_v55, %v1086_v56  ;;  %v2851_v54 = vcombine.high %v1043_v35, %v1047_v52  ;;  %v1051_v55 = vld [vmem:[#allocation7 + $0x2c8] sm:$0xff] }
  0xd7   :  { %v1055_v56 = vld [vmem:[#allocation7 + $0x2e8] sm:$0xff] }
  0xd8   :  { %1802 = vmatprep.subr.bf16.mxu1 %v2889_v57  ;;  %v2850_v57 = vcombine.low %v1043_v35, %v1047_v52  ;;  %v1012_v35 = vld [vmem:[#allocation7 + $0x190] sm:$0xff] }
  0xd9   :  { %883 = vmatpush1.bf16.msra.mxu0 %v3184_v61  ;;  %v2771_v61 = vcombine.high %v963_v59, %v967_v60  ;;  %v1059_v59 = vld [vmem:[#allocation7 + $0x308] sm:$0xff]  ;;  %v1016_v52 = vld [vmem:[#allocation7 + $0x1b0] sm:$0xff] }
  0xda   :  { %884 = vmatprep.subr.bf16.mxu0 %v3189_v63  ;;  %1803 = vmatpush1.bf16.msra.mxu1 %v2888_v58  ;;  %v199_v63 = vlaneseq  ;;  %v2859_v58 = vcombine.high %v1051_v55, %v1055_v56  ;;  %v1063_v60 = vld [vmem:[#allocation7 + $0x328] sm:$0xff] }
  0xdb   :  { %1813 = vmatprep.subr.bf16.mxu1 %v2771_v61  ;;  %v2858_v61 = vcombine.low %v1051_v55, %v1055_v56  ;;  %v2821_v55 = vcombine.high %v1012_v35, %v1016_v52  ;;  %v1020_v56 = vld [vmem:[#allocation7 + $0x1d0] sm:$0xff] }
  0xdc   :  { %v3544_v0 = vshrl.u32 %v199_v63, 7  ;;  %v1067_v63 = vld [vmem:[#allocation7 + $0x348] sm:$0xff] }
  0xdd   :  { %885 = vmatpush1.bf16.msra.mxu0 %v3187_v3 }
  0xde   :  { %886 = vmatprep.subr.bf16.mxu0 %v3192_v5  ;;  %v201_v1 = vsub.s32 0, %v3544_v0  ;;  %v205_v3 = vsub.s32 1, %v3544_v0 }
  0xe0   :  { %v202_v4 = vrot.slane %v197_v2, %v201_v1  ;;  %v206_v5 = vrot.slane %v197_v2, %v205_v3  ;;  %v1071_v2 = vld [vmem:[#allocation7 + $0x368] sm:$0xff] }
  0xe1   :  { %887 = vmatpush1.bf16.msra.mxu0 %v3190_v9 }
  0xe2   :  { %888 = vmatprep.subr.bf16.mxu0 %v3195_v11 }
  0xe5   :  { %889 = vmatpush1.bf16.msra.mxu0 %v3193_v13 }
  0xe6   :  { %890 = vmatprep.subr.bf16.mxu0 %v3198_v14  ;;  %v971_v14 = vld [vmem:[#allocation7 + $0x48] sm:$0xff] }
  0xe9   :  { %891 = vmatpush1.bf16.msra.mxu0 %v3196_v15  ;;  %v975_v15 = vld [vmem:[#allocation7 + $0x68] sm:$0xff] }
  0xea   :  { %892 = vmatprep.subr.bf16.mxu0 %v3201_v16 }
  0xed   :  { %893 = vmatpush1.bf16.msra.mxu0 %v3199_v17 }
  0xee   :  { %894 = vmatprep.subr.bf16.mxu0 %v3204_v18  ;;  %v2779_v18 = vcombine.high %v971_v14, %v975_v15 }
  0xf1   :  { %895 = vmatpush1.bf16.msra.mxu0 %v3202_v19  ;;  %v979_v19 = vld [vmem:[#allocation7 + $0x88] sm:$0xff] }
  0xf2   :  { %896 = vmatprep.subr.bf16.mxu0 %v3207_v20  ;;  %v983_v20 = vld [vmem:[#allocation7 + $0xa8] sm:$0xff] }
  0xf5   :  { %897 = vmatpush1.bf16.msra.mxu0 %v3205_v21  ;;  %v2778_v21 = vcombine.low %v971_v14, %v975_v15  ;;  %v964_v14 = vld [vmem:[#allocation7 + $0x10] sm:$0xff] }
  0xf6   :  { %898 = vmatprep.subr.bf16.mxu0 %v3210_v22  ;;  %v2787_v22 = vcombine.high %v979_v19, %v983_v20  ;;  %v968_v15 = vld [vmem:[#allocation7 + $0x30] sm:$0xff] }
  0xf9   :  { %899 = vmatpush1.bf16.msra.mxu0 %v3208_v23  ;;  %v987_v23 = vld [vmem:[#allocation7 + $0xc8] sm:$0xff] }
  0xfa   :  { %900 = vmatprep.subr.bf16.mxu0 %v3213_v24  ;;  %v991_v24 = vld [vmem:[#allocation7 + $0xe8] sm:$0xff] }
  0xfd   :  { %901 = vmatpush1.bf16.msra.mxu0 %v3211_v25  ;;  %v2786_v25 = vcombine.low %v979_v19, %v983_v20  ;;  %v2773_v19 = vcombine.high %v964_v14, %v968_v15  ;;  %v972_v20 = vld [vmem:[#allocation7 + $0x50] sm:$0xff] }
  0xfe   :  { %902 = vmatprep.subr.bf16.mxu0 %v3216_v26  ;;  %v2795_v26 = vcombine.high %v987_v23, %v991_v24 }
 0x101   :  { %903 = vmatpush1.bf16.msra.mxu0 %v3214_v27  ;;  %v995_v27 = vld [vmem:[#allocation7 + $0x108] sm:$0xff] }
 0x102   :  { %904 = vmatprep.subr.bf16.mxu0 %v3219_v28  ;;  %v999_v28 = vld [vmem:[#allocation7 + $0x128] sm:$0xff] }
 0x105   :  { %905 = vmatpush1.bf16.msra.mxu0 %v3217_v29  ;;  %v2794_v29 = vcombine.low %v987_v23, %v991_v24  ;;  %v3251_v23 = vld [vmem:[#allocation8] sm:$0xff]   ;;  %v2772_v24 = vcombine.low %v964_v14, %v968_v15 }
 0x106   :  { %906 = vmatprep.subr.bf16.mxu0 %v3222_v30  ;;  %v2803_v30 = vcombine.high %v995_v27, %v999_v28 }
 0x109   :  { %907 = vmatpush1.bf16.msra.mxu0 %v3220_v31  ;;  %v1003_v31 = vld [vmem:[#allocation7 + $0x148] sm:$0xff] }
 0x10a   :  { %917 = vmatprep.subr.bf16.mxu0 %v3227_v32  ;;  %v1007_v32 = vld [vmem:[#allocation7 + $0x168] sm:$0xff] }
 0x10c   :  { %909 = vmatmul.mubr.bf16.vlgmr.msra.gmra.mrb[0].mxu0 %v2653_v33  ;;  %v2802_v33 = vcombine.low %v995_v27, %v999_v28  ;;  %v984_v27 = vld [vmem:[#allocation7 + $0xb0] sm:$0xff]  ;;  %v3252_v28 = vld [vmem:[#allocation8 + $0x48] sm:$0xff]  }
 0x10d   :  { %918 = vmatpush1.bf16.msra.mxu0 %v3225_v34  ;;  %949 = vmatprep.mubr.bf16.mxu0 %v3442_v39  ;;  %v2811_v34 = vcombine.high %v1003_v31, %v1007_v32  ;;  %v2810_v39 = vcombine.low %v1003_v31, %v1007_v32 }
 0x10e   :  { %919 = vmatprep.subr.bf16.mxu0 %v3230_v37  ;;  %v1011_v37 = vld [vmem:[#allocation7 + $0x188] sm:$0xff] }
 0x111   :  { %920 = vmatpush1.bf16.msra.mxu0 %v3228_v38  ;;  %v1015_v38 = vld [vmem:[#allocation7 + $0x1a8] sm:$0xff] }
 0x112   :  { %921 = vmatprep.subr.bf16.mxu0 %v3233_v40  ;;  %v2819_v40 = vcombine.high %v1011_v37, %v1015_v38 }
 0x115   :  { %922 = vmatpush1.bf16.msra.mxu0 %v3231_v41  ;;  %v1019_v41 = vld [vmem:[#allocation7 + $0x1c8] sm:$0xff] }
 0x116   :  { %923 = vmatprep.subr.bf16.mxu0 %v3236_v42  ;;  %v1023_v42 = vld [vmem:[#allocation7 + $0x1e8] sm:$0xff] }
 0x119   :  { %924 = vmatpush1.bf16.msra.mxu0 %v3234_v43  ;;  %v2818_v43 = vcombine.low %v1011_v37, %v1015_v38  ;;  %v3255_v37 = vld [vmem:[#allocation8 + $0x10] sm:$0xff]   ;;  %v3256_v38 = vld [vmem:[#allocation8 + $0x58] sm:$0xff]  }
 0x11a   :  { %925 = vmatprep.subr.bf16.mxu0 %v3239_v44  ;;  %v2827_v44 = vcombine.high %v1019_v41, %v1023_v42 }
 0x11d   :  { %926 = vmatpush1.bf16.msra.mxu0 %v3237_v36  ;;  %v1027_v36 = vld [vmem:[#allocation7 + $0x208] sm:$0xff] }
 0x11e   :  { %927 = vmatprep.subr.bf16.mxu0 %v3242_v45  ;;  %v1031_v45 = vld [vmem:[#allocation7 + $0x228] sm:$0xff] }
 0x121   :  { %928 = vmatpush1.bf16.msra.mxu0 %v3240_v46  ;;  %v2826_v46 = vcombine.low %v1019_v41, %v1023_v42  ;;  %v996_v41 = vld [vmem:[#allocation7 + $0x110] sm:$0xff] }
 0x122   :  { %929 = vmatprep.subr.bf16.mxu0 %v3245_v47  ;;  %v2835_v47 = vcombine.high %v1027_v36, %v1031_v45  ;;  %v1000_v42 = vld [vmem:[#allocation7 + $0x130] sm:$0xff] }
 0x125   :  { %930 = vmatpush1.bf16.msra.mxu0 %v3243_v48  ;;  %v1035_v48 = vld [vmem:[#allocation7 + $0x248] sm:$0xff] }
 0x126   :  { %931 = vmatprep.subr.bf16.mxu0 %v3248_v49  ;;  %v1039_v49 = vld [vmem:[#allocation7 + $0x268] sm:$0xff] }
 0x127   :  { %v2842_v53 = vcombine.low %v1035_v48, %v1039_v49 }
 0x129   :  { %932 = vmatpush1.bf16.msra.mxu0 %v3246_v50  ;;  %v2834_v50 = vcombine.low %v1027_v36, %v1031_v45  ;;  %v2805_v45 = vcombine.high %v996_v41, %v1000_v42 }
 0x12c   :  { %950 = vmatmul.mubr.bf16.vlgmr.msra.gmra.mrb[0].mxu0 %v3249_v51  ;;  %v2843_v51 = vcombine.high %v1035_v48, %v1039_v49  ;;  %v3259_v48 = vld [vmem:[#allocation8 + $0x20] sm:$0xff]   ;;  %v3260_v49 = vld [vmem:[#allocation8 + $0x68] sm:$0xff]  }
 0x1ff   :  { %v951_v6 = vpop.f32.mrb[0].mxu0 }
 0x200   :  { %v3049_v7 = vadd.f32 %v951_v6, %v202_v4  ;;  %v953_v8 = vpop.f32.mrb[1].mxu0  ;;  %v2866_v4 = vcombine.low %v1059_v59, %v1063_v60  ;;  %v1075_v6 = vld [vmem:[#allocation7 + $0x388] sm:$0xff] }
 0x201   :  { %v3050_v9 = vadd.f32 %v953_v8, %v206_v5  ;;  %v955_v10 = vpop.f32.mrb[2].mxu0  ;;  %v2875_v5 = vcombine.high %v1067_v63, %v1071_v2  ;;  %v2874_v8 = vcombine.low %v1067_v63, %v1071_v2  ;;  %v1032_v63 = vld [vmem:[#allocation7 + $0x230] sm:$0xff]  ;;  %v3264_v2 = vld [vmem:[#allocation8 + $0x78] sm:$0xff]  }
 0x202   :  { %v958_v11 = vmax.f32 %v3049_v7, 0.0  ;;  %v956_v12 = vpop.f32.mrb[3].mxu0  ;;  %v1079_v7 = vld [vmem:[#allocation7 + $0x3a8] sm:$0xff] }
 0x203   :  { %v959_v13 = vmax.f32 %v3050_v9, 0.0  ;;  %v2883_v9 = vcombine.high %v1075_v6, %v1079_v7  ;;  %v1083_v10 = vld [vmem:[#allocation7 + $0x3c8] sm:$0xff]  ;;  %v2882_v12 = vcombine.low %v1075_v6, %v1079_v7  ;;  %v1036_v7 = vld [vmem:[#allocation7 + $0x250] sm:$0xff] }
 0x204   :  { %v3557_v17 = vpack.c.bf16 %v958_v11, %v958_v11  ;;  %v1087_v11 = vld [vmem:[#allocation7 + $0x3e8] sm:$0xff] }
 0x205   :  { %v3555_v16 = vpack.c.bf16 %v959_v13, %v959_v13  ;;  %v2891_v13 = vcombine.high %v1083_v10, %v1087_v11 }
 0x207   :  { %1804 = vmatprep.mubr.bf16.mxu1 %v3555_v16 }
 0x208   :  { %1805 = vmatmul.mubr.bf16.vlgmr.msra.gmra.mrb[0].mxu1 %v3557_v17 }
 0x209   :  { %1814 = vmatpush1.bf16.msra.mxu1 %v2770_v62  ;;  %1845 = vmatprep.mubr.bf16.mxu1 %v3555_v16  ;;  %v2867_v62 = vcombine.high %v1059_v59, %v1063_v60  ;;  %v3263_v59 = vld [vmem:[#allocation8 + $0x30] sm:$0xff]   ;;  %v2820_v60 = vcombine.low %v1012_v35, %v1016_v52  ;;  %v993_v35 = vld [vmem:[#allocation7 + $0xf8] sm:$0xff] }
 0x20a   :  { %1815 = vmatprep.subr.bf16.mxu1 %v2779_v18  ;;  %v2890_v18 = vcombine.low %v1083_v10, %v1087_v11 }
 0x20d   :  { %1816 = vmatpush1.bf16.msra.mxu1 %v2778_v21  ;;  %v976_v21 = vld [vmem:[#allocation7 + $0x70] sm:$0xff] }
 0x20e   :  { %1817 = vmatprep.subr.bf16.mxu1 %v2787_v22  ;;  %v3250_v22 = vld [vmem:[#allocation8 + $0x40] sm:$0xff]   ;;  %v2780_v31 = vcombine.low %v972_v20, %v976_v21 }
 0x20f   :  { %2961 = vmatprep.subr.bf16.mxu0 %v3250_v22  ;;  %v1060_v22 = vld [vmem:[#allocation7 + $0x310] sm:$0xff] }
 0x210   :  { %2962 = vmatpush3.bf16.msra.mxu0 %v3251_v23  ;;  %v1064_v23 = vld [vmem:[#allocation7 + $0x330] sm:$0xff] }
 0x211   :  { %1818 = vmatpush1.bf16.msra.mxu1 %v2786_v25  ;;  %v2781_v25 = vcombine.high %v972_v20, %v976_v21  ;;  %2963 = vmatprep.subr.bf16.mxu0 %v3252_v28  ;;  %v2868_v28 = vcombine.low %v1060_v22, %v1064_v23 }
 0x212   :  { %1819 = vmatprep.subr.bf16.mxu1 %v2795_v26  ;;  %v980_v26 = vld [vmem:[#allocation7 + $0x90] sm:$0xff] }
 0x213   :  { %v2789_v32 = vcombine.high %v980_v26, %v984_v27 }
 0x215   :  { %1820 = vmatpush1.bf16.msra.mxu1 %v2794_v29  ;;  %v3253_v29 = vld [vmem:[#allocation8 + $0x8] sm:$0xff]  }
 0x216   :  { %1821 = vmatprep.subr.bf16.mxu1 %v2803_v30  ;;  %v3254_v30 = vld [vmem:[#allocation8 + $0x50] sm:$0xff]   ;;  %2964 = vmatpush3.bf16.msra.mxu0 %v3253_v29 }
 0x217   :  { %2965 = vmatprep.subr.bf16.mxu0 %v3254_v30  ;;  %v1076_v30 = vld [vmem:[#allocation7 + $0x390] sm:$0xff] }
 0x219   :  { %1822 = vmatpush1.bf16.msra.mxu1 %v2802_v33  ;;  %v988_v33 = vld [vmem:[#allocation7 + $0xd0] sm:$0xff] }
 0x21a   :  { %1823 = vmatprep.subr.bf16.mxu1 %v2811_v34  ;;  %v992_v34 = vld [vmem:[#allocation7 + $0xf0] sm:$0xff]  ;;  %2966 = vmatpush3.bf16.msra.mxu0 %v3255_v37 }
 0x21b   :  { %2967 = vmatprep.subr.bf16.mxu0 %v3256_v38  ;;  %v2796_v36 = vcombine.low %v988_v33, %v992_v34  ;;  %v1088_v37 = vld [vmem:[#allocation7 + $0x3f0] sm:$0xff] }
 0x21d   :  { %1824 = vmatpush1.bf16.msra.mxu1 %v2810_v39  ;;  %v2788_v39 = vcombine.low %v980_v26, %v984_v27  ;;  %v1068_v26 = vld [vmem:[#allocation7 + $0x350] sm:$0xff] }
 0x21e   :  { %1825 = vmatprep.subr.bf16.mxu1 %v2819_v40  ;;  %v2797_v40 = vcombine.high %v988_v33, %v992_v34  ;;  %v1072_v27 = vld [vmem:[#allocation7 + $0x370] sm:$0xff] }
 0x21f   :  { %v2877_v29 = vcombine.high %v1068_v26, %v1072_v27  ;;  %v1084_v34 = vld [vmem:[#allocation7 + $0x3d0] sm:$0xff] }
 0x221   :  { %1826 = vmatpush1.bf16.msra.mxu1 %v2818_v43  ;;  %v3257_v43 = vld [vmem:[#allocation8 + $0x18] sm:$0xff]  }
 0x222   :  { %1827 = vmatprep.subr.bf16.mxu1 %v2827_v44  ;;  %v3258_v44 = vld [vmem:[#allocation8 + $0x60] sm:$0xff]   ;;  %2968 = vmatpush3.bf16.msra.mxu0 %v3257_v43 }
 0x223   :  { %2969 = vmatprep.subr.bf16.mxu0 %v3258_v44  ;;  %v973_v44 = vld [vmem:[#allocation7 + $0x58] sm:$0xff] }
 0x225   :  { %1828 = vmatpush1.bf16.msra.mxu1 %v2826_v46  ;;  %v1004_v46 = vld [vmem:[#allocation7 + $0x150] sm:$0xff] }
 0x226   :  { %1829 = vmatprep.subr.bf16.mxu1 %v2835_v47  ;;  %v1008_v47 = vld [vmem:[#allocation7 + $0x170] sm:$0xff]  ;;  %2970 = vmatpush3.bf16.msra.mxu0 %v3259_v48  ;;  %v985_v48 = vld [vmem:[#allocation7 + $0xb8] sm:$0xff] }
 0x227   :  { %2971 = vmatprep.subr.bf16.mxu0 %v3260_v49 }
 0x229   :  { %1830 = vmatpush1.bf16.msra.mxu1 %v2834_v50  ;;  %v2804_v50 = vcombine.low %v996_v41, %v1000_v42  ;;  %v969_v41 = vld [vmem:[#allocation7 + $0x38] sm:$0xff]  ;;  %v2892_v42 = vcombine.low %v1084_v34, %v1088_v37 }
 0x22a   :  { %1831 = vmatprep.subr.bf16.mxu1 %v2843_v51  ;;  %v2813_v51 = vcombine.high %v1004_v46, %v1008_v47 }
 0x22d   :  { %1832 = vmatpush1.bf16.msra.mxu1 %v2842_v53  ;;  %v3261_v53 = vld [vmem:[#allocation8 + $0x28] sm:$0xff]  }
 0x22e   :  { %1833 = vmatprep.subr.bf16.mxu1 %v2851_v54  ;;  %v2812_v54 = vcombine.low %v1004_v46, %v1008_v47  ;;  %2972 = vmatpush3.bf16.msra.mxu0 %v3261_v53  ;;  %v981_v47 = vld [vmem:[#allocation7 + $0x98] sm:$0xff] }
 0x22f   :  { %v2790_v52 = vcombine.low %v981_v47, %v985_v48 }
 0x231   :  { %1834 = vmatpush1.bf16.msra.mxu1 %v2850_v57  ;;  %v1024_v57 = vld [vmem:[#allocation7 + $0x1f0] sm:$0xff] }
 0x232   :  { %1835 = vmatprep.subr.bf16.mxu1 %v2859_v58  ;;  %v3262_v58 = vld [vmem:[#allocation8 + $0x70] sm:$0xff]  }
 0x233   :  { %2973 = vmatprep.subr.bf16.mxu0 %v3262_v58  ;;  %v1005_v58 = vld [vmem:[#allocation7 + $0x158] sm:$0xff] }
 0x234   :  { %2974 = vmatpush3.bf16.msra.mxu0 %v3263_v59  ;;  %v1009_v59 = vld [vmem:[#allocation7 + $0x178] sm:$0xff] }
 0x235   :  { %1836 = vmatpush1.bf16.msra.mxu1 %v2858_v61  ;;  %v2829_v61 = vcombine.high %v1020_v56, %v1024_v57  ;;  %2975 = vmatprep.subr.bf16.mxu0 %v3264_v2 }
 0x236   :  { %1837 = vmatprep.subr.bf16.mxu1 %v2867_v62  ;;  %v1028_v62 = vld [vmem:[#allocation7 + $0x210] sm:$0xff] }
 0x237   :  { %v2837_v6 = vcombine.high %v1028_v62, %v1032_v63  ;;  %v2836_v10 = vcombine.low %v1028_v62, %v1032_v63  ;;  %v1017_v62 = vld [vmem:[#allocation7 + $0x1b8] sm:$0xff]  ;;  %v2814_v63 = vcombine.low %v1005_v58, %v1009_v59 }
 0x239   :  { %1838 = vmatpush1.bf16.msra.mxu1 %v2866_v4  ;;  %v3265_v4 = vld [vmem:[#allocation8 + $0x38] sm:$0xff]  }
 0x23a   :  { %1839 = vmatprep.subr.bf16.mxu1 %v2875_v5  ;;  %v2828_v5 = vcombine.low %v1020_v56, %v1024_v57  ;;  %2976 = vmatpush3.bf16.msra.mxu0 %v3265_v4  ;;  %v1021_v4 = vld [vmem:[#allocation7 + $0x1d8] sm:$0xff] }
 0x23d   :  { %1840 = vmatpush1.bf16.msra.mxu1 %v2874_v8  ;;  %v1040_v8 = vld [vmem:[#allocation7 + $0x270] sm:$0xff] }
 0x23e   :  { %1841 = vmatprep.subr.bf16.mxu1 %v2883_v9  ;;  %v3266_v9 = vld [vmem:[#allocation8 + $0xc0] sm:$0xff]   ;;  %v2845_v11 = vcombine.high %v1036_v7, %v1040_v8  ;;  %v2844_v14 = vcombine.low %v1036_v7, %v1040_v8  ;;  %v1029_v8 = vld [vmem:[#allocation7 + $0x218] sm:$0xff] }
 0x23f   :  { %2983 = vmatprep.subr.bf16.mxu0 %v3266_v9  ;;  %v1033_v9 = vld [vmem:[#allocation7 + $0x238] sm:$0xff] }
 0x241   :  { %1842 = vmatpush1.bf16.msra.mxu1 %v2882_v12  ;;  %v1044_v12 = vld [vmem:[#allocation7 + $0x290] sm:$0xff] }
 0x242   :  { %1843 = vmatprep.subr.bf16.mxu1 %v2891_v13  ;;  %v1048_v13 = vld [vmem:[#allocation7 + $0x2b0] sm:$0xff] }
 0x243   :  { %v2853_v15 = vcombine.high %v1044_v12, %v1048_v13  ;;  %v2852_v20 = vcombine.low %v1044_v12, %v1048_v13  ;;  %v1037_v12 = vld [vmem:[#allocation7 + $0x258] sm:$0xff] }
 0x244   :  { %v1041_v13 = vld [vmem:[#allocation7 + $0x278] sm:$0xff] }
 0x245   :  { %1844 = vmatpush1.bf16.msra.mxu1 %v2890_v18  ;;  %v1052_v18 = vld [vmem:[#allocation7 + $0x2d0] sm:$0xff] }
 0x246   :  { %1854 = vmatprep.subr.bf16.mxu1 %v2773_v19  ;;  %v1056_v19 = vld [vmem:[#allocation7 + $0x2f0] sm:$0xff] }
 0x247   :  { %v2861_v21 = vcombine.high %v1052_v18, %v1056_v19 }
 0x248   :  { %1846 = vmatmul.mubr.bf16.vlgmr.msra.gmra.mrb[4].mxu1 %v3557_v17 }
 0x249   :  { %1855 = vmatpush1.bf16.msra.mxu1 %v2772_v24  ;;  %1886 = vmatprep.mubr.bf16.mxu1 %v3555_v16  ;;  %v2860_v24 = vcombine.low %v1052_v18, %v1056_v19  ;;  %v1045_v18 = vld [vmem:[#allocation7 + $0x298] sm:$0xff] }
 0x24a   :  { %1856 = vmatprep.subr.bf16.mxu1 %v2781_v25  ;;  %v2869_v25 = vcombine.high %v1060_v22, %v1064_v23  ;;  %v1049_v19 = vld [vmem:[#allocation7 + $0x2b8] sm:$0xff] }
 0x24b   :  { %v1053_v22 = vld [vmem:[#allocation7 + $0x2d8] sm:$0xff] }
 0x24c   :  { %v1057_v23 = vld [vmem:[#allocation7 + $0x2f8] sm:$0xff] }
 0x24d   :  { %1857 = vmatpush1.bf16.msra.mxu1 %v2780_v31  ;;  %v1080_v31 = vld [vmem:[#allocation7 + $0x3b0] sm:$0xff] }
 0x24e   :  { %1858 = vmatprep.subr.bf16.mxu1 %v2789_v32  ;;  %v2876_v32 = vcombine.low %v1068_v26, %v1072_v27  ;;  %v2885_v33 = vcombine.high %v1076_v30, %v1080_v31  ;;  %v2884_v38 = vcombine.low %v1076_v30, %v1080_v31  ;;  %v1061_v26 = vld [vmem:[#allocation7 + $0x318] sm:$0xff] }
 0x24f   :  { %v1065_v27 = vld [vmem:[#allocation7 + $0x338] sm:$0xff] }
 0x250   :  { %v1069_v30 = vld [vmem:[#allocation7 + $0x358] sm:$0xff] }
 0x251   :  { %1859 = vmatpush1.bf16.msra.mxu1 %v2788_v39  ;;  %v2893_v39 = vcombine.high %v1084_v34, %v1088_v37  ;;  %v1073_v31 = vld [vmem:[#allocation7 + $0x378] sm:$0xff] }
 0x252   :  { %1860 = vmatprep.subr.bf16.mxu1 %v2797_v40  ;;  %v965_v40 = vld [vmem:[#allocation7 + $0x18] sm:$0xff] }
 0x253   :  { %v2775_v43 = vcombine.high %v965_v40, %v969_v41  ;;  %v1077_v34 = vld [vmem:[#allocation7 + $0x398] sm:$0xff] }
 0x254   :  { %v1081_v37 = vld [vmem:[#allocation7 + $0x3b8] sm:$0xff] }
 0x255   :  { %1861 = vmatpush1.bf16.msra.mxu1 %v2796_v36  ;;  %v977_v36 = vld [vmem:[#allocation7 + $0x78] sm:$0xff] }
 0x256   :  { %1862 = vmatprep.subr.bf16.mxu1 %v2805_v45  ;;  %v2774_v45 = vcombine.low %v965_v40, %v969_v41  ;;  %v2783_v46 = vcombine.high %v973_v44, %v977_v36  ;;  %v2782_v49 = vcombine.low %v973_v44, %v977_v36  ;;  %v1085_v40 = vld [vmem:[#allocation7 + $0x3d8] sm:$0xff]  ;;  %v3282_v36 = vld [vmem:[#allocation8 + $0x140] sm:$0xff]  }
 0x257   :  { %v1089_v41 = vld [vmem:[#allocation7 + $0x3f8] sm:$0xff] }
 0x258   :  { %v2894_v44 = vcombine.low %v1085_v40, %v1089_v41 }
 0x259   :  { %1863 = vmatpush1.bf16.msra.mxu1 %v2804_v50  ;;  %v2791_v50 = vcombine.high %v981_v47, %v985_v48  ;;  %v3285_v47 = vld [vmem:[#allocation8 + $0x108] sm:$0xff]   ;;  %v3286_v48 = vld [vmem:[#allocation8 + $0x150] sm:$0xff]  }
 0x25a   :  { %1864 = vmatprep.subr.bf16.mxu1 %v2813_v51  ;;  %v989_v51 = vld [vmem:[#allocation7 + $0xd8] sm:$0xff] }
 0x25b   :  { %v2799_v53 = vcombine.high %v989_v51, %v993_v35  ;;  %v2798_v56 = vcombine.low %v989_v51, %v993_v35  ;;  %v3289_v51 = vld [vmem:[#allocation8 + $0x118] sm:$0xff]   ;;  %v3290_v35 = vld [vmem:[#allocation8 + $0x160] sm:$0xff]  }
 0x25d   :  { %1865 = vmatpush1.bf16.msra.mxu1 %v2812_v54  ;;  %v997_v54 = vld [vmem:[#allocation7 + $0x118] sm:$0xff] }
 0x25e   :  { %1866 = vmatprep.subr.bf16.mxu1 %v2821_v55  ;;  %v1001_v55 = vld [vmem:[#allocation7 + $0x138] sm:$0xff] }
 0x25f   :  { %v2807_v57 = vcombine.high %v997_v54, %v1001_v55 }
 0x261   :  { %1867 = vmatpush1.bf16.msra.mxu1 %v2820_v60  ;;  %v2806_v60 = vcombine.low %v997_v54, %v1001_v55 }
 0x262   :  { %1868 = vmatprep.subr.bf16.mxu1 %v2829_v61  ;;  %v1013_v61 = vld [vmem:[#allocation7 + $0x198] sm:$0xff] }
 0x263   :  { %v2823_v2 = vcombine.high %v1013_v61, %v1017_v62 }
 0x265   :  { %1869 = vmatpush1.bf16.msra.mxu1 %v2828_v5  ;;  %v1025_v5 = vld [vmem:[#allocation7 + $0x1f8] sm:$0xff] }
 0x266   :  { %1870 = vmatprep.subr.bf16.mxu1 %v2837_v6  ;;  %v2822_v6 = vcombine.low %v1013_v61, %v1017_v62  ;;  %v2831_v7 = vcombine.high %v1021_v4, %v1025_v5  ;;  %v3295_v62 = vld [vmem:[#allocation8 + $0x130] sm:$0xff]  }
 0x269   :  { %1871 = vmatpush1.bf16.msra.mxu1 %v2836_v10  ;;  %v2830_v10 = vcombine.low %v1021_v4, %v1025_v5  ;;  %v3296_v4 = vld [vmem:[#allocation8 + $0x178] sm:$0xff]  }
 0x26a   :  { %1872 = vmatprep.subr.bf16.mxu1 %v2845_v11  ;;  %v2839_v11 = vcombine.high %v1029_v8, %v1033_v9 }
 0x26d   :  { %1873 = vmatpush1.bf16.msra.mxu1 %v2844_v14  ;;  %v2838_v14 = vcombine.low %v1029_v8, %v1033_v9  ;;  %v3268_v8 = vld [vmem:[#allocation8 + $0xc8] sm:$0xff]  }
 0x26e   :  { %1874 = vmatprep.subr.bf16.mxu1 %v2853_v15  ;;  %v2847_v15 = vcombine.high %v1037_v12, %v1041_v13  ;;  %v3269_v9 = vld [vmem:[#allocation8 + $0x88] sm:$0xff]  }
 0x271   :  { %1875 = vmatpush1.bf16.msra.mxu1 %v2852_v20  ;;  %v2846_v20 = vcombine.low %v1037_v12, %v1041_v13  ;;  %v3272_v12 = vld [vmem:[#allocation8 + $0xd8] sm:$0xff]  }
 0x272   :  { %1876 = vmatprep.subr.bf16.mxu1 %v2861_v21  ;;  %v2855_v21 = vcombine.high %v1045_v18, %v1049_v19  ;;  %v3273_v13 = vld [vmem:[#allocation8 + $0x98] sm:$0xff]  }
 0x275   :  { %1877 = vmatpush1.bf16.msra.mxu1 %v2860_v24  ;;  %v2854_v24 = vcombine.low %v1045_v18, %v1049_v19  ;;  %v3276_v18 = vld [vmem:[#allocation8 + $0xe8] sm:$0xff]  }
 0x276   :  { %1878 = vmatprep.subr.bf16.mxu1 %v2869_v25  ;;  %v2863_v25 = vcombine.high %v1053_v22, %v1057_v23  ;;  %v3277_v19 = vld [vmem:[#allocation8 + $0xa8] sm:$0xff]  }
 0x279   :  { %1879 = vmatpush1.bf16.msra.mxu1 %v2868_v28  ;;  %v2862_v28 = vcombine.low %v1053_v22, %v1057_v23  ;;  %v3280_v22 = vld [vmem:[#allocation8 + $0xf8] sm:$0xff]  }
 0x27a   :  { %1880 = vmatprep.subr.bf16.mxu1 %v2877_v29  ;;  %v2871_v29 = vcombine.high %v1061_v26, %v1065_v27  ;;  %v3281_v23 = vld [vmem:[#allocation8 + $0xb8] sm:$0xff]  }
 0x27d   :  { %1881 = vmatpush1.bf16.msra.mxu1 %v2876_v32  ;;  %v2870_v32 = vcombine.low %v1061_v26, %v1065_v27  ;;  %v1106_v26 = vsub.s32 3, %v3544_v0 }
 0x27e   :  { %1882 = vmatprep.subr.bf16.mxu1 %v2885_v33  ;;  %v2879_v33 = vcombine.high %v1069_v30, %v1073_v31 }
 0x281   :  { %1883 = vmatpush1.bf16.msra.mxu1 %v2884_v38  ;;  %v2878_v38 = vcombine.low %v1069_v30, %v1073_v31 }
 0x282   :  { %1884 = vmatprep.subr.bf16.mxu1 %v2893_v39  ;;  %v2887_v39 = vcombine.high %v1077_v34, %v1081_v37 }
 0x285   :  { %1885 = vmatpush1.bf16.msra.mxu1 %v2892_v42  ;;  %v2886_v42 = vcombine.low %v1077_v34, %v1081_v37 }
 0x286   :  { %1895 = vmatprep.subr.bf16.mxu1 %v2775_v43  ;;  %v2895_v43 = vcombine.high %v1085_v40, %v1089_v41  ;;  %v3299_v40 = vld [vmem:[#allocation8 + $0x180] sm:$0xff]  }
 0x288   :  { %1887 = vmatmul.mubr.bf16.vlgmr.msra.gmra.mrb[8].mxu1 %v3557_v17 }
 0x289   :  { %1896 = vmatpush1.bf16.msra.mxu1 %v2774_v45  ;;  %1927 = vmatprep.mubr.bf16.mxu1 %v3555_v16  ;;  %v2815_v16 = vcombine.high %v1005_v58, %v1009_v59  ;;  %v3283_v45 = vld [vmem:[#allocation8 + $0x100] sm:$0xff]  }
 0x28a   :  { %1897 = vmatprep.subr.bf16.mxu1 %v2783_v46  ;;  %v3284_v46 = vld [vmem:[#allocation8 + $0x148] sm:$0xff]  }
 0x28d   :  { %1898 = vmatpush1.bf16.msra.mxu1 %v2782_v49  ;;  %v3287_v49 = vld [vmem:[#allocation8 + $0x110] sm:$0xff]  }
 0x28e   :  { %1899 = vmatprep.subr.bf16.mxu1 %v2791_v50  ;;  %v3288_v50 = vld [vmem:[#allocation8 + $0x158] sm:$0xff]  }
 0x291   :  { %1900 = vmatpush1.bf16.msra.mxu1 %v2790_v52  ;;  %v3570_v52 = vld [vmem:[%s3609_s4] sm:$0xff] }
 0x292   :  { %1901 = vmatprep.subr.bf16.mxu1 %v2799_v53  ;;  %v3291_v53 = vld [vmem:[#allocation8 + $0x120] sm:$0xff]   ;;  %v1095_v54 = vrot.slane %v3570_v52, %v201_v1  ;;  %v1099_v55 = vrot.slane %v3570_v52, %v205_v3  ;;  %v3297_v3 = vld [vmem:[#allocation8 + $0x138] sm:$0xff]  }
 0x295   :  { %1902 = vmatpush1.bf16.msra.mxu1 %v2798_v56  ;;  %v3293_v56 = vld [vmem:[#allocation8 + $0x128] sm:$0xff]  }
 0x296   :  { %1903 = vmatprep.subr.bf16.mxu1 %v2807_v57  ;;  %v3294_v57 = vld [vmem:[#allocation8 + $0x170] sm:$0xff]  }
 0x299   :  { %1904 = vmatpush1.bf16.msra.mxu1 %v2806_v60 }
 0x29a   :  { %1905 = vmatprep.subr.bf16.mxu1 %v2815_v16 }
 0x29d   :  { %1906 = vmatpush1.bf16.msra.mxu1 %v2814_v63 }
 0x29e   :  { %1907 = vmatprep.subr.bf16.mxu1 %v2823_v2 }
 0x2a1   :  { %1908 = vmatpush1.bf16.msra.mxu1 %v2822_v6  ;;  %v3267_v6 = vld [vmem:[#allocation8 + $0x80] sm:$0xff]  }
 0x2a2   :  { %1909 = vmatprep.subr.bf16.mxu1 %v2831_v7 }
 0x2a5   :  { %1910 = vmatpush1.bf16.msra.mxu1 %v2830_v10  ;;  %v3270_v10 = vld [vmem:[#allocation8 + $0xd0] sm:$0xff]  }
 0x2a6   :  { %1911 = vmatprep.subr.bf16.mxu1 %v2839_v11  ;;  %v3271_v11 = vld [vmem:[#allocation8 + $0x90] sm:$0xff]  }
 0x2a9   :  { %1912 = vmatpush1.bf16.msra.mxu1 %v2838_v14  ;;  %v3274_v14 = vld [vmem:[#allocation8 + $0xe0] sm:$0xff]  }
 0x2aa   :  { %1913 = vmatprep.subr.bf16.mxu1 %v2847_v15  ;;  %v3275_v15 = vld [vmem:[#allocation8 + $0xa0] sm:$0xff]  }
 0x2ad   :  { %1914 = vmatpush1.bf16.msra.mxu1 %v2846_v20  ;;  %v3278_v20 = vld [vmem:[#allocation8 + $0xf0] sm:$0xff]  }
 0x2ae   :  { %1915 = vmatprep.subr.bf16.mxu1 %v2855_v21  ;;  %v3279_v21 = vld [vmem:[#allocation8 + $0xb0] sm:$0xff]  }
 0x2b1   :  { %1916 = vmatpush1.bf16.msra.mxu1 %v2854_v24  ;;  %v3298_v24 = vld [vmem:[#allocation8 + $0x1c0] sm:$0xff]  }
 0x2b2   :  { %1917 = vmatprep.subr.bf16.mxu1 %v2863_v25  ;;  %v1102_v25 = vsub.s32 2, %v3544_v0 }
 0x2b4   :  { %v1103_v27 = vrot.slane %v3570_v52, %v1102_v25 }
 0x2b5   :  { %1918 = vmatpush1.bf16.msra.mxu1 %v2862_v28  ;;  %v1107_v28 = vrot.slane %v3570_v52, %v1106_v26 }
 0x2b6   :  { %1919 = vmatprep.subr.bf16.mxu1 %v2871_v29 }
 0x2b9   :  { %1920 = vmatpush1.bf16.msra.mxu1 %v2870_v32 }
 0x2ba   :  { %1921 = vmatprep.subr.bf16.mxu1 %v2879_v33 }
 0x2bd   :  { %1922 = vmatpush1.bf16.msra.mxu1 %v2878_v38 }
 0x2be   :  { %1923 = vmatprep.subr.bf16.mxu1 %v2887_v39 }
 0x2c1   :  { %1924 = vmatpush1.bf16.msra.mxu1 %v2886_v42  ;;  %v3300_v42 = vld [vmem:[#allocation8 + $0x1c8] sm:$0xff]  }
 0x2c2   :  { %1925 = vmatprep.subr.bf16.mxu1 %v2895_v43  ;;  %v3301_v43 = vld [vmem:[#allocation8 + $0x188] sm:$0xff]  }
 0x2c5   :  { %1926 = vmatpush1.bf16.msra.mxu1 %v2894_v44  ;;  %v3302_v44 = vld [vmem:[#allocation8 + $0x1d0] sm:$0xff]  }
 0x2c6   :  { %3005 = vmatprep.subr.bf16.mxu1 %v3282_v36  ;;  %v3303_v36 = vld [vmem:[#allocation8 + $0x190] sm:$0xff]  }
 0x2c8   :  { %1928 = vmatmul.mubr.bf16.vlgmr.msra.gmra.mrb[12].mxu1 %v3557_v17  ;;  %v3292_v17 = vld [vmem:[#allocation8 + $0x168] sm:$0xff]  }
 0x2c9   :  { %3006 = vmatpush3.bf16.msra.mxu1 %v3283_v45  ;;  %v3304_v45 = vld [vmem:[#allocation8 + $0x1d8] sm:$0xff]  }
 0x2ca   :  { %3007 = vmatprep.subr.bf16.mxu1 %v3284_v46  ;;  %v3305_v46 = vld [vmem:[#allocation8 + $0x198] sm:$0xff]  }
 0x2cd   :  { %3008 = vmatpush3.bf16.msra.mxu1 %v3285_v47  ;;  %v3306_v47 = vld [vmem:[#allocation8 + $0x1e0] sm:$0xff]  }
 0x2ce   :  { %3009 = vmatprep.subr.bf16.mxu1 %v3286_v48  ;;  %v3307_v48 = vld [vmem:[#allocation8 + $0x1a0] sm:$0xff]  }
 0x2d1   :  { %3010 = vmatpush3.bf16.msra.mxu1 %v3287_v49  ;;  %v3308_v49 = vld [vmem:[#allocation8 + $0x1e8] sm:$0xff]  }
 0x2d2   :  { %3011 = vmatprep.subr.bf16.mxu1 %v3288_v50  ;;  %v3309_v50 = vld [vmem:[#allocation8 + $0x1a8] sm:$0xff]  }
 0x2d5   :  { %3012 = vmatpush3.bf16.msra.mxu1 %v3289_v51  ;;  %v3310_v51 = vld [vmem:[#allocation8 + $0x1f0] sm:$0xff]  }
 0x2d6   :  { %3013 = vmatprep.subr.bf16.mxu1 %v3290_v35  ;;  %v3311_v35 = vld [vmem:[#allocation8 + $0x1b0] sm:$0xff]  }
 0x2d9   :  { %3014 = vmatpush3.bf16.msra.mxu1 %v3291_v53  ;;  %v3312_v53 = vld [vmem:[#allocation8 + $0x1f8] sm:$0xff]  }
 0x2da   :  { %3015 = vmatprep.subr.bf16.mxu1 %v3292_v17  ;;  %v3313_v17 = vld [vmem:[#allocation8 + $0x1b8] sm:$0xff]  }
 0x2db   :  { %v1806_v58 = vpop.f32.mrb[0].mxu1 }
 0x2dc   :  { %v1807_v59 = vadd.f32 %v1806_v58, %v1095_v54  ;;  %v1808_v60 = vpop.f32.mrb[1].mxu1  ;;  %v1110_v54 = vsub.s32 4, %v3544_v0 }
 0x2dd   :  { %v1809_v16 = vadd.f32 %v1808_v60, %v1099_v55  ;;  %v1810_v61 = vpop.f32.mrb[2].mxu1  ;;  %3016 = vmatpush3.bf16.msra.mxu1 %v3293_v56  ;;  %v1114_v55 = vsub.s32 5, %v3544_v0 }
 0x2de   :  { %v1936_v63 = vmax.f32 %v1807_v59, 0.0  ;;  %v1811_v2 = vpop.f32.mrb[3].mxu1  ;;  %3017 = vmatprep.subr.bf16.mxu1 %v3294_v57  ;;  %v1111_v56 = vrot.slane %v3570_v52, %v1110_v54 }
 0x2df   :  { %v1937_v1 = vmax.f32 %v1809_v16, 0.0  ;;  %v1115_v57 = vrot.slane %v3570_v52, %v1114_v55 }
 0x2e0   :  { %v1944_v7 = vpack.c.bf16 %v1936_v63, %v1936_v63 }
 0x2e1   :  { %v1945_v5 = vpack.c.bf16 %v1937_v1, %v1937_v1  ;;  %3018 = vmatpush3.bf16.msra.mxu1 %v3295_v62 }
 0x2e2   :  { %3019 = vmatprep.subr.bf16.mxu1 %v3296_v4 }
 0x2e3   :  { %2503 = vmatprep.mubr.bf16.mxu0 %v1945_v5  ;;  %v1118_v5 = vsub.s32 6, %v3544_v0 }
 0x2e4   :  { %2504 = vmatmul.mubr.bf16.vlgmr.msra.gmra.mrb[4].mxu0 %v1944_v7 }
 0x2e5   :  { %2984 = vmatpush3.bf16.msra.mxu0 %v3267_v6  ;;  %3020 = vmatpush3.bf16.msra.mxu1 %v3297_v3  ;;  %v1122_v6 = vsub.s32 7, %v3544_v0  ;;  %v1119_v3 = vrot.slane %v3570_v52, %v1118_v5 }
 0x2e6   :  { %2985 = vmatprep.subr.bf16.mxu0 %v3268_v8 }
 0x2e7   :  { %v1123_v7 = vrot.slane %v3570_v52, %v1122_v6  ;;  %v2896_v52 = vld [vmem:[%s3611_s6] ss:$0 sm:$0xff]  ;;  %s3402_s6 = scalar_lea.vmem %s2639_s9, 128 }
 0x2e8   :  { %p3403_p4 = scmp.ne.s32.totalorder %s2639_s9, %s3402_s6  ;;  %p3408_p6 = scmp.lt.s32.totalorder %s3402_s6, %s3402_s6 }
 0x2e9   :  { %2986 = vmatpush3.bf16.msra.mxu0 %v3269_v9 }
 0x2ea   :  { %2987 = vmatprep.subr.bf16.mxu0 %v3270_v10  ;;  %p3409_p7 = por %p3408_p6, %p3407_p5 }
 0x2ec   :  { %p3410_p8 = pnand %p3409_p7, %p3403_p4 }
 0x2ed   :  { %2988 = vmatpush3.bf16.msra.mxu0 %v3271_v11 }
 0x2ee   :  { %2989 = vmatprep.subr.bf16.mxu0 %v3272_v12 }
 0x2f1   :  { %2990 = vmatpush3.bf16.msra.mxu0 %v3273_v13 }
 0x2f2   :  { %2991 = vmatprep.subr.bf16.mxu0 %v3274_v14 }
 0x2f5   :  { %2992 = vmatpush3.bf16.msra.mxu0 %v3275_v15 }
 0x2f6   :  { %2993 = vmatprep.subr.bf16.mxu0 %v3276_v18 }
 0x2f9   :  { %2994 = vmatpush3.bf16.msra.mxu0 %v3277_v19 }
 0x2fa   :  { %2995 = vmatprep.subr.bf16.mxu0 %v3278_v20 }
 0x2fd   :  { %2996 = vmatpush3.bf16.msra.mxu0 %v3279_v21 }
 0x2fe   :  { %2997 = vmatprep.subr.bf16.mxu0 %v3280_v22 }
 0x301   :  { %2998 = vmatpush3.bf16.msra.mxu0 %v3281_v23 }
 0x302   :  { %3027 = vmatprep.subr.bf16.mxu0 %v3298_v24 }
 0x31b   :  { %v1847_v29 = vpop.f32.mrb[4].mxu1 }
 0x31c   :  { %v1848_v30 = vadd.f32 %v1847_v29, %v1103_v27  ;;  %v1849_v31 = vpop.f32.mrb[5].mxu1 }
 0x31d   :  { %v1850_v32 = vadd.f32 %v1849_v31, %v1107_v28  ;;  %v1851_v33 = vpop.f32.mrb[6].mxu1 }
 0x31e   :  { %v1938_v34 = vmax.f32 %v1848_v30, 0.0  ;;  %v1852_v37 = vpop.f32.mrb[7].mxu1 }
 0x31f   :  { %v1939_v38 = vmax.f32 %v1850_v32, 0.0 }
 0x320   :  { %v1946_v41 = vpack.c.bf16 %v1938_v34, %v1938_v34 }
 0x321   :  { %v1947_v39 = vpack.c.bf16 %v1939_v38, %v1939_v38 }
 0x323   :  { %2543 = vmatprep.mubr.bf16.mxu0 %v1947_v39 }
 0x324   :  { %2544 = vmatmul.mubr.bf16.vlgmr.msra.gmra.mrb[8].mxu0 %v1946_v41 }
 0x325   :  { %3028 = vmatpush3.bf16.msra.mxu0 %v3299_v40 }
 0x326   :  { %3029 = vmatprep.subr.bf16.mxu0 %v3300_v42 }
 0x329   :  { %3030 = vmatpush3.bf16.msra.mxu0 %v3301_v43 }
 0x32a   :  { %3031 = vmatprep.subr.bf16.mxu0 %v3302_v44 }
 0x32d   :  { %3032 = vmatpush3.bf16.msra.mxu0 %v3303_v36 }
 0x32e   :  { %3033 = vmatprep.subr.bf16.mxu0 %v3304_v45 }
 0x331   :  { %3034 = vmatpush3.bf16.msra.mxu0 %v3305_v46 }
 0x332   :  { %3035 = vmatprep.subr.bf16.mxu0 %v3306_v47 }
 0x335   :  { %3036 = vmatpush3.bf16.msra.mxu0 %v3307_v48 }
 0x336   :  { %3037 = vmatprep.subr.bf16.mxu0 %v3308_v49 }
 0x339   :  { %3038 = vmatpush3.bf16.msra.mxu0 %v3309_v50 }
 0x33a   :  { %3039 = vmatprep.subr.bf16.mxu0 %v3310_v51 }
 0x33d   :  { %3040 = vmatpush3.bf16.msra.mxu0 %v3311_v35 }
 0x33e   :  { %3041 = vmatprep.subr.bf16.mxu0 %v3312_v53 }
 0x341   :  { %3042 = vmatpush3.bf16.msra.mxu0 %v3313_v17 }
 0x35b   :  { %v1888_v58 = vpop.f32.mrb[8].mxu1 }
 0x35c   :  { %v1889_v59 = vadd.f32 %v1888_v58, %v1111_v56  ;;  %v1890_v60 = vpop.f32.mrb[9].mxu1 }
 0x35d   :  { %v1891_v16 = vadd.f32 %v1890_v60, %v1115_v57  ;;  %v1892_v61 = vpop.f32.mrb[10].mxu1 }
 0x35e   :  { %v1940_v62 = vmax.f32 %v1889_v59, 0.0  ;;  %v1893_v63 = vpop.f32.mrb[11].mxu1 }
 0x35f   :  { %v1941_v2 = vmax.f32 %v1891_v16, 0.0 }
 0x360   :  { %v1948_v1 = vpack.c.bf16 %v1940_v62, %v1940_v62 }
 0x361   :  { %v1949_v4 = vpack.c.bf16 %v1941_v2, %v1941_v2 }
 0x363   :  { %2583 = vmatprep.mubr.bf16.mxu1 %v1949_v4 }
 0x364   :  { %2584 = vmatmul.mubr.bf16.vlgmr.msra.gmra.mrb[16].mxu1 %v1948_v1 }
 0x39b   :  { %v1929_v8 = vpop.f32.mrb[12].mxu1 }
 0x39c   :  { %v1930_v9 = vadd.f32 %v1929_v8, %v1119_v3  ;;  %v1931_v10 = vpop.f32.mrb[13].mxu1 }
 0x39d   :  { %v1932_v11 = vadd.f32 %v1931_v10, %v1123_v7  ;;  %v1933_v12 = vpop.f32.mrb[14].mxu1 }
 0x39e   :  { %v1942_v13 = vmax.f32 %v1930_v9, 0.0  ;;  %v1934_v14 = vpop.f32.mrb[15].mxu1 }
 0x39f   :  { %v1943_v15 = vmax.f32 %v1932_v11, 0.0 }
 0x3a0   :  { %v1950_v19 = vpack.c.bf16 %v1942_v13, %v1942_v13 }
 0x3a1   :  { %v1951_v18 = vpack.c.bf16 %v1943_v15, %v1943_v15 }
 0x3a3   :  { %2623 = vmatprep.mubr.bf16.mxu0 %v1951_v18 }
 0x3a4   :  { %2624 = vmatmul.mubr.bf16.vlgmr.msra.gmra.mrb[12].mxu0 %v1950_v19 }
 0x3b7   :  { %v2977_v20 = vpop.f32.mrb[4].mxu0 }
 0x3b8   :  { %v2978_v21 = vpop.f32.mrb[5].mxu0 }
 0x3b9   :  { %v2979_v22 = vadd.f32 %v2978_v21, %v2977_v20  ;;  %v2980_v0 = vpop.f32.mrb[6].mxu0 }
 0x3ba   :  { %v2981_v23 = vpop.f32.mrb[7].mxu0 }
 0x3bb   :  { %v2506_v26 = vadd.f32 %v2979_v22, %v2896_v52 }
 0x3f7   :  { %v2999_v24 = vpop.f32.mrb[8].mxu0 }
 0x3f8   :  { %v3000_v25 = vpop.f32.mrb[9].mxu0 }
 0x3f9   :  { %v3001_v27 = vadd.f32 %v3000_v25, %v2999_v24  ;;  %v3002_v28 = vpop.f32.mrb[10].mxu0 }
 0x3fa   :  { %v3003_v29 = vpop.f32.mrb[11].mxu0 }
 0x3fb   :  { %v2546_v30 = vadd.f32 %v3001_v27, %v2506_v26 }
 0x437   :  { %v3021_v31 = vpop.f32.mrb[16].mxu1 }
 0x438   :  { %v3022_v32 = vpop.f32.mrb[17].mxu1 }
 0x439   :  { %v3023_v33 = vadd.f32 %v3022_v32, %v3021_v31  ;;  %v3024_v34 = vpop.f32.mrb[18].mxu1 }
 0x43a   :  { %v3025_v37 = vpop.f32.mrb[19].mxu1 }
 0x43b   :  { %v2586_v38 = vadd.f32 %v3023_v33, %v2546_v30 }
 0x477   :  { %v3043_v39 = vpop.f32.mrb[12].mxu0 }
 0x478   :  { %v3044_v40 = vpop.f32.mrb[13].mxu0 }
 0x479   :  { %v3045_v41 = vadd.f32 %v3044_v40, %v3043_v39  ;;  %v3046_v42 = vpop.f32.mrb[14].mxu0 }
 0x47a   :  { %v3047_v43 = vpop.f32.mrb[15].mxu0 }
 0x47b   :  { %v2626_v44 = vadd.f32 %v3045_v41, %v2586_v38 }
 0x47d   :  { %2631 = vst [vmem:[#allocation10] sm:$0xff] %v2626_v44 }
 0x47e   :  { %3413 = shalt.err (!%p3410_p8)
}
 0x47f   :  { %s3414_s12 = scalar_lea.hbm %s3612_s7, 128 }
 0x480   :  { %p3415_p9 = scmp.ne.s32.totalorder %s3612_s7, %s3414_s12  ;;  %p3418_p10 = scmp.lt.u32.totalorder %s3414_s12, %s3612_s7 }
 0x482   :  { %p3420_p11 = pnand %p3418_p10, %p3415_p9 }
 0x484   :  { %3423 = shalt.err (!%p3420_p11)
}
 0x485   :  { %2641 = dma.vmem_to_hbm [thread:$0]  %s2639_s9, 128, %s3612_s7, [#allocation4]  }
 0x486   :  { %3430 = dma.done.wait [#allocation4], 128  }
 0x487   :  { %3431 = vsyncadd [#allocation4], 4294967168 }
 0x488   :  { %2645 = vsyncpa [#allocation3], 1 }
 0x489   :  { %2646 = vsyncpa [#allocation6], 1 }
 0x48a   :  { %2647 = vsyncpa [#allocation9], 1 }
 0x48b   :  { %2648 = vsyncpa [#allocation4], 1 }

</bundles_post_ra>
